<compile_context>
chip_gen: v7x
topology: tpu7x:2x2x1
jax: 0.10.0
libtpu: 0.0.40
codegen_flags: <defaults>
</compile_context>

<pallas_src>
import math
import functools

import jax
import jax.numpy as jnp
from jax.experimental import pallas as pl
from jax.experimental.pallas import tpu as pltpu

LN_EPS = 1e-5                   # PyTorch nn.LayerNorm default
MATMUL_DTYPE = jnp.bfloat16     # MXU input dtype (set jnp.float32 for bit-tight checks)

# number of weight/bias/ln tensors per expert type (e % 4)
_N_MATS = {0: 8, 1: 10, 2: 6, 3: 4}


# ------------------------------- helpers ------------------------------------

def _gelu_exact(x):
    # exact (erf) GELU, matching PyTorch nn.GELU() default
    return 0.5 * x * (1.0 + jax.lax.erf(x * (1.0 / math.sqrt(2.0))))


def _layernorm_f32(x, g, b):
    mu = jnp.mean(x, axis=-1, keepdims=True)
    var = jnp.mean(jnp.square(x - mu), axis=-1, keepdims=True)
    return (x - mu) * jax.lax.rsqrt(var + LN_EPS) * g + b


def _row_tile(m):
    """Largest multiple-of-8 divisor of m (<=512), preferring >=2 grid steps."""
    best = None
    for t in range(8, min(m, 512) + 1, 8):
        if m % t == 0 and (m // t) >= 2:
            best = t
    if best is None:
        for t in range(8, min(m, 512) + 1, 8):
            if m % t == 0:
                best = t
    return best if best is not None else m


def _topk_mask(routing, k):
    """Row-wise mask of the k largest entries (ties -> lowest index).

    Iterative argmax (k unrolled) — small E, VPU/XLU only, no lax.top_k needed
    inside the Mosaic kernel.
    """
    E = routing.shape[-1]
    col = jax.lax.broadcasted_iota(jnp.int32, routing.shape, dimension=1)
    work = routing
    mask = jnp.zeros_like(routing)
    for _ in range(k):
        mx = jnp.max(work, axis=-1, keepdims=True)
        idx = jnp.min(jnp.where(work == mx, col, E), axis=-1, keepdims=True)
        sel = col == idx
        mask = jnp.where(sel, 1.0, mask)
        work = jnp.where(sel, -jnp.inf, work)
    return mask


def _expert_fwd(spec_type, xb, mats):
    """One expert on a bf16 token tile xb [tm,H]; returns f32 [tm,H]."""
    up_w, up_b = mats[0], mats[1]
    down_w, down_b = mats[-2], mats[-1]
    spec = mats[2:-2]

    h = jnp.dot(xb, up_w, preferred_element_type=jnp.float32) + up_b
    h = _gelu_exact(h)

    if spec_type == 0:      # Linear -> LayerNorm -> GELU
        sw, sb, sg, sbeta = spec
        t = jnp.dot(h.astype(MATMUL_DTYPE), sw,
                    preferred_element_type=jnp.float32) + sb
        h = _gelu_exact(_layernorm_f32(t, sg, sbeta))
    elif spec_type == 1:    # Linear -> GELU -> Linear -> LayerNorm
        s1w, s1b, s2w, s2b, sg, sbeta = spec
        t = _gelu_exact(jnp.dot(h.astype(MATMUL_DTYPE), s1w,
                                preferred_element_type=jnp.float32) + s1b)
        t = jnp.dot(t.astype(MATMUL_DTYPE), s2w,
                    preferred_element_type=jnp.float32) + s2b
        h = _layernorm_f32(t, sg, sbeta)
    elif spec_type == 2:    # Linear -> Dropout(identity in eval) -> GELU
        sw, sb = spec
        h = _gelu_exact(jnp.dot(h.astype(MATMUL_DTYPE), sw,
                                preferred_element_type=jnp.float32) + sb)
    # spec_type == 3: Identity

    return jnp.dot(h.astype(MATMUL_DTYPE), down_w,
                   preferred_element_type=jnp.float32) + down_b


# ------------------------------ fused MoE kernel -----------------------------

def make_moe_kernel(expert_types, k, use_expert_choice):
    """LN + router + softmax/top-k + all experts + residual, one token tile."""
    def kernel(x_ref, g_ref, b_ref, rw_ref, *refs):
        out_ref, logits_ref = refs[-2], refs[-1]
        mat_refs = refs[:-2]

        x = x_ref[...].astype(jnp.float32)
        xn = _layernorm_f32(x, g_ref[...], b_ref[...])

        # Router kept in f32 so top-k expert selection matches the f32 reference.
        logits = jnp.dot(xn, rw_ref[...], preferred_element_type=jnp.float32)
        logits_ref[...] = logits

        # Per-token routing is row-local -> fully computable inside the tile.
        m = jnp.max(logits, axis=-1, keepdims=True)
        ez = jnp.exp(logits - m)
        routing = ez / jnp.sum(ez, axis=-1, keepdims=True)
        if not use_expert_choice:
            mask = _topk_mask(routing, k)
            routing = routing * mask
            routing = routing / jnp.sum(routing, axis=-1, keepdims=True)

        xb = xn.astype(MATMUL_DTYPE)
        acc = x                        # residual init -> the final "+ x" is free
        off = 0
        for e, t in enumerate(expert_types):
            n = _N_MATS[t]
            mats = [r[...] for r in mat_refs[off:off + n]]
            off += n
            y = _expert_fwd(t, xb, mats)
            acc = acc + routing[:, e:e + 1] * y
        out_ref[...] = acc.astype(out_ref.dtype)
    return kernel


def moe_fused_pallas(x2, pparams, expert_types, k, use_expert_choice, tm):
    M, H = x2.shape
    E = pparams["router_w_t"].shape[1]
    row = lambda i: (i, 0)
    const = lambda i: (0, 0)

    mats = [m for em in pparams["experts"] for m in em]
    in_specs = [pl.BlockSpec((tm, H), row),          # token tile
                pl.BlockSpec((1, H), const),         # ln gamma
                pl.BlockSpec((1, H), const),         # ln beta
                pl.BlockSpec((H, E), const)]         # router weights
    in_specs += [pl.BlockSpec(w.shape, const) for w in mats]   # resident weights

    out, logits = pl.pallas_call(
        make_moe_kernel(tuple(expert_types), k, use_expert_choice),
        out_shape=(jax.ShapeDtypeStruct((M, H), x2.dtype),
                   jax.ShapeDtypeStruct((M, E), jnp.float32)),
        grid=(M // tm,),
        in_specs=in_specs,
        out_specs=(pl.BlockSpec((tm, H), row),
                   pl.BlockSpec((tm, E), row)),
        compiler_params=pltpu.CompilerParams(dimension_semantics=("parallel",)),
    )(x2, pparams["ln_g"], pparams["ln_b"], pparams["router_w_t"], *mats)
    return out, logits


# --------------------------- aux losses (tiny, plain JAX) ---------------------

def _aux_losses(logits, config):
    aux = {}
    if config["router_z_loss_coef"] > 0:
        z = jnp.mean(jnp.square(jax.scipy.special.logsumexp(logits, axis=-1)))
        aux["router_z_loss"] = z * config["router_z_loss_coef"]
    if config["use_load_balancing"]:
        routing = jax.nn.softmax(logits, axis=-1)
        usage = jnp.mean(routing, axis=(0, 1))
        target = jnp.ones_like(usage) / config["num_experts"]
        aux["load_balancing_loss"] = jnp.sum(target * jnp.log(target / usage)) * 0.01
    return aux


def _route(logits, config):
    """Reference-path routing (used by the pure-JAX reference only)."""
    routing = jax.nn.softmax(logits, axis=-1)
    aux = {}
    if config["router_z_loss_coef"] > 0:
        z = jnp.mean(jnp.square(jax.scipy.special.logsumexp(logits, axis=-1)))
        aux["router_z_loss"] = z * config["router_z_loss_coef"]
    if config["use_load_balancing"]:
        usage = jnp.mean(routing, axis=(0, 1))
        target = jnp.ones_like(usage) / config["num_experts"]
        aux["load_balancing_loss"] = jnp.sum(target * jnp.log(target / usage)) * 0.01
    if not config["use_expert_choice_routing"]:
        k = config["num_experts_per_token"]
        _, idx = jax.lax.top_k(routing, k)
        mask = jnp.sum(jax.nn.one_hot(idx, routing.shape[-1], dtype=routing.dtype),
                       axis=-2)
        routing = routing * mask
        routing = routing / jnp.sum(routing, axis=-1, keepdims=True)
    return routing, aux


# ------------------------------ forward (Pallas) ------------------------------

def moe_forward_pallas(x, pparams, config):
    B, S, H = x.shape
    M = B * S
    tm = _row_tile(M)
    x2 = x.reshape(M, H)

    expert_types = [e % 4 for e in range(config["num_experts"])]
    out2, logits = moe_fused_pallas(
        x2, pparams, expert_types,
        config["num_experts_per_token"],
        config["use_expert_choice_routing"], tm)

    aux = _aux_losses(logits.reshape(B, S, -1), config)
    return out2.reshape(B, S, H), aux


# --------------------------- parameters ---------------------------------------

def init_params(key, config):
    H, EH, E = config["hidden_size"], config["expert_hidden_size"], config["num_experts"]
    keys = iter(jax.random.split(key, 128))

    def lin(in_d, out_d, std=0.05):
        # PyTorch Linear layout: weight [out, in], bias [out]
        return {"w": jax.random.normal(next(keys), (out_d, in_d), jnp.float32) * std,
                "b": jax.random.normal(next(keys), (out_d,), jnp.float32) * std}

    def lnp(d):
        return {"g": 1.0 + 0.05 * jax.random.normal(next(keys), (d,), jnp.float32),
                "b": 0.05 * jax.random.normal(next(keys), (d,), jnp.float32)}

    params = {"ln": lnp(H),
              "router_w": jax.random.normal(next(keys), (E, H), jnp.float32) * 0.01,
              "experts": []}
    for e in range(E):
        t = e % 4
        ep = {"up": lin(H, EH), "down": lin(EH, H)}
        if t == 0:
            ep["s0"] = lin(EH, EH); ep["s_ln"] = lnp(EH)
        elif t == 1:
            ep["s1a"] = lin(EH, EH // 2); ep["s1b"] = lin(EH // 2, EH); ep["s_ln"] = lnp(EH)
        elif t == 2:
            ep["s2"] = lin(EH, EH)
        params["experts"].append(ep)
    return params


def prepare_pallas_params(params):
    """Pre-transpose weights to [in,out] and pre-cast matmul operands to bf16."""
    def wt(p):
        return jnp.asarray(p["w"].T, MATMUL_DTYPE)

    def bias(p):
        return p["b"].reshape(1, -1).astype(jnp.float32)

    def lnrow(v):
        return v.reshape(1, -1).astype(jnp.float32)

    pp = {"ln_g": lnrow(params["ln"]["g"]),
          "ln_b": lnrow(params["ln"]["b"]),
          # router stays f32 so expert top-k selection is numerically stable
          "router_w_t": params["router_w"].T.astype(jnp.float32),
          "experts": []}
    for e, ep in enumerate(params["experts"]):
        t = e % 4
        mats = [wt(ep["up"]), bias(ep["up"])]
        if t == 0:
            mats += [wt(ep["s0"]), bias(ep["s0"]),
                     lnrow(ep["s_ln"]["g"]), lnrow(ep["s_ln"]["b"])]
        elif t == 1:
            mats += [wt(ep["s1a"]), bias(ep["s1a"]),
                     wt(ep["s1b"]), bias(ep["s1b"]),
                     lnrow(ep["s_ln"]["g"]), lnrow(ep["s_ln"]["b"])]
        elif t == 2:
            mats += [wt(ep["s2"]), bias(ep["s2"])]
        mats += [wt(ep["down"]), bias(ep["down"])]
        assert len(mats) == _N_MATS[t]
        pp["experts"].append(mats)
    return pp


# --------------------------- pure-JAX (f32) reference --------------------------

def moe_forward_ref(x, params, config):
    def lin(t, p):
        return t @ p["w"].T + p["b"]

    def ln(t, g, b):
        mu = jnp.mean(t, -1, keepdims=True)
        var = jnp.mean(jnp.square(t - mu), -1, keepdims=True)
        return (t - mu) * jax.lax.rsqrt(var + LN_EPS) * g + b

    gelu = lambda t: 0.5 * t * (1.0 + jax.lax.erf(t / math.sqrt(2.0)))

    norm = ln(x, params["ln"]["g"], params["ln"]["b"])
    logits = norm @ params["router_w"].T
    routing, aux = _route(logits, config)

    out = jnp.zeros_like(x)
    for e, ep in enumerate(params["experts"]):
        h = gelu(lin(norm, ep["up"]))
        t = e % 4
        if t == 0:
            h = gelu(ln(lin(h, ep["s0"]), ep["s_ln"]["g"], ep["s_ln"]["b"]))
        elif t == 1:
            hh = gelu(lin(h, ep["s1a"]))
            hh = lin(hh, ep["s1b"])
            h = ln(hh, ep["s_ln"]["g"], ep["s_ln"]["b"])
        elif t == 2:
            h = gelu(lin(h, ep["s2"]))
        y = lin(h, ep["down"])
        out = out + y * routing[:, :, e][..., None]
    return out + x, aux


# ----------------------------------- main --------------------------------------

if __name__ == "__main__":
    config = dict(hidden_size=32, expert_hidden_size=64, num_experts=4,
                  num_experts_per_token=2, expert_dropout=0.1,
                  router_jitter_noise=0.01, router_z_loss_coef=1e-3,
                  use_load_balancing=True, use_expert_choice_routing=False)
    B, S, H = 2, 8, config["hidden_size"]

    key = jax.random.PRNGKey(0)
    kx, kp = jax.random.split(key)
    x = jax.random.normal(kx, (B, S, H), jnp.float32)

    params = init_params(kp, config)
    pparams = prepare_pallas_params(params)

    fwd = jax.jit(functools.partial(moe_forward_pallas, config=config))
    out, aux = fwd(x, pparams)
    out = jax.block_until_ready(out)

    ref_out, ref_aux = moe_forward_ref(x, params, config)

    assert out.shape == (B, S, H), out.shape
    max_err = float(jnp.max(jnp.abs(out - ref_out)))
    # tolerance covers bf16 MXU inputs (f32 accumulation); residual & stats are f32
    assert max_err < 2e-2, f"max_err={max_err}"
    for k_ in ref_aux:
        aerr = float(jnp.abs(aux[k_] - ref_aux[k_]))
        assert aerr < 1e-3, f"{k_}: {aerr}"

    print("KERNEL_OK")
</pallas_src>

<mosaic_0001>
module attributes {stable_mosaic.version = 11 : i64} {
  func.func @kernel(%arg0: i32, %arg1: memref<8x32xf32, #tpu.memory_space<vmem>>, %arg2: memref<1x32xf32, #tpu.memory_space<vmem>>, %arg3: memref<1x32xf32, #tpu.memory_space<vmem>>, %arg4: memref<32x4xf32, #tpu.memory_space<vmem>>, %arg5: memref<32x64xbf16, #tpu.memory_space<vmem>>, %arg6: memref<1x64xf32, #tpu.memory_space<vmem>>, %arg7: memref<64x64xbf16, #tpu.memory_space<vmem>>, %arg8: memref<1x64xf32, #tpu.memory_space<vmem>>, %arg9: memref<1x64xf32, #tpu.memory_space<vmem>>, %arg10: memref<1x64xf32, #tpu.memory_space<vmem>>, %arg11: memref<64x32xbf16, #tpu.memory_space<vmem>>, %arg12: memref<1x32xf32, #tpu.memory_space<vmem>>, %arg13: memref<32x64xbf16, #tpu.memory_space<vmem>>, %arg14: memref<1x64xf32, #tpu.memory_space<vmem>>, %arg15: memref<64x32xbf16, #tpu.memory_space<vmem>>, %arg16: memref<1x32xf32, #tpu.memory_space<vmem>>, %arg17: memref<32x64xbf16, #tpu.memory_space<vmem>>, %arg18: memref<1x64xf32, #tpu.memory_space<vmem>>, %arg19: memref<1x64xf32, #tpu.memory_space<vmem>>, %arg20: memref<1x64xf32, #tpu.memory_space<vmem>>, %arg21: memref<64x32xbf16, #tpu.memory_space<vmem>>, %arg22: memref<1x32xf32, #tpu.memory_space<vmem>>, %arg23: memref<32x64xbf16, #tpu.memory_space<vmem>>, %arg24: memref<1x64xf32, #tpu.memory_space<vmem>>, %arg25: memref<64x64xbf16, #tpu.memory_space<vmem>>, %arg26: memref<1x64xf32, #tpu.memory_space<vmem>>, %arg27: memref<64x32xbf16, #tpu.memory_space<vmem>>, %arg28: memref<1x32xf32, #tpu.memory_space<vmem>>, %arg29: memref<32x64xbf16, #tpu.memory_space<vmem>>, %arg30: memref<1x64xf32, #tpu.memory_space<vmem>>, %arg31: memref<64x32xbf16, #tpu.memory_space<vmem>>, %arg32: memref<1x32xf32, #tpu.memory_space<vmem>>, %arg33: memref<8x32xf32, #tpu.memory_space<vmem>>, %arg34: memref<8x4xf32, #tpu.memory_space<vmem>>) attributes {dimension_semantics = [#tpu.dimension_semantics<parallel>], iteration_bounds = array<i64: 2>, scalar_prefetch = 0 : i64, scratch_operands = 0 : i64, tpu.core_type = #tpu.core_type<tc>, window_params = [{transform_indices = @transform_0, window_bounds = array<i64: 8, 32>}, {pipeline_mode = #tpu.pipeline_mode<synchronous>, transform_indices = @transform_1, window_bounds = array<i64: 1, 32>}, {pipeline_mode = #tpu.pipeline_mode<synchronous>, transform_indices = @transform_2, window_bounds = array<i64: 1, 32>}, {pipeline_mode = #tpu.pipeline_mode<synchronous>, transform_indices = @transform_3, window_bounds = array<i64: 32, 4>}, {pipeline_mode = #tpu.pipeline_mode<synchronous>, transform_indices = @transform_4, window_bounds = array<i64: 32, 64>}, {pipeline_mode = #tpu.pipeline_mode<synchronous>, transform_indices = @transform_5, window_bounds = array<i64: 1, 64>}, {pipeline_mode = #tpu.pipeline_mode<synchronous>, transform_indices = @transform_6, window_bounds = array<i64: 64, 64>}, {pipeline_mode = #tpu.pipeline_mode<synchronous>, transform_indices = @transform_7, window_bounds = array<i64: 1, 64>}, {pipeline_mode = #tpu.pipeline_mode<synchronous>, transform_indices = @transform_8, window_bounds = array<i64: 1, 64>}, {pipeline_mode = #tpu.pipeline_mode<synchronous>, transform_indices = @transform_9, window_bounds = array<i64: 1, 64>}, {pipeline_mode = #tpu.pipeline_mode<synchronous>, transform_indices = @transform_10, window_bounds = array<i64: 64, 32>}, {pipeline_mode = #tpu.pipeline_mode<synchronous>, transform_indices = @transform_11, window_bounds = array<i64: 1, 32>}, {pipeline_mode = #tpu.pipeline_mode<synchronous>, transform_indices = @transform_12, window_bounds = array<i64: 32, 64>}, {pipeline_mode = #tpu.pipeline_mode<synchronous>, transform_indices = @transform_13, window_bounds = array<i64: 1, 64>}, {pipeline_mode = #tpu.pipeline_mode<synchronous>, transform_indices = @transform_14, window_bounds = array<i64: 64, 32>}, {pipeline_mode = #tpu.pipeline_mode<synchronous>, transform_indices = @transform_15, window_bounds = array<i64: 1, 32>}, {pipeline_mode = #tpu.pipeline_mode<synchronous>, transform_indices = @transform_16, window_bounds = array<i64: 32, 64>}, {pipeline_mode = #tpu.pipeline_mode<synchronous>, transform_indices = @transform_17, window_bounds = array<i64: 1, 64>}, {pipeline_mode = #tpu.pipeline_mode<synchronous>, transform_indices = @transform_18, window_bounds = array<i64: 1, 64>}, {pipeline_mode = #tpu.pipeline_mode<synchronous>, transform_indices = @transform_19, window_bounds = array<i64: 1, 64>}, {pipeline_mode = #tpu.pipeline_mode<synchronous>, transform_indices = @transform_20, window_bounds = array<i64: 64, 32>}, {pipeline_mode = #tpu.pipeline_mode<synchronous>, transform_indices = @transform_21, window_bounds = array<i64: 1, 32>}, {pipeline_mode = #tpu.pipeline_mode<synchronous>, transform_indices = @transform_22, window_bounds = array<i64: 32, 64>}, {pipeline_mode = #tpu.pipeline_mode<synchronous>, transform_indices = @transform_23, window_bounds = array<i64: 1, 64>}, {pipeline_mode = #tpu.pipeline_mode<synchronous>, transform_indices = @transform_24, window_bounds = array<i64: 64, 64>}, {pipeline_mode = #tpu.pipeline_mode<synchronous>, transform_indices = @transform_25, window_bounds = array<i64: 1, 64>}, {pipeline_mode = #tpu.pipeline_mode<synchronous>, transform_indices = @transform_26, window_bounds = array<i64: 64, 32>}, {pipeline_mode = #tpu.pipeline_mode<synchronous>, transform_indices = @transform_27, window_bounds = array<i64: 1, 32>}, {pipeline_mode = #tpu.pipeline_mode<synchronous>, transform_indices = @transform_28, window_bounds = array<i64: 32, 64>}, {pipeline_mode = #tpu.pipeline_mode<synchronous>, transform_indices = @transform_29, window_bounds = array<i64: 1, 64>}, {pipeline_mode = #tpu.pipeline_mode<synchronous>, transform_indices = @transform_30, window_bounds = array<i64: 64, 32>}, {pipeline_mode = #tpu.pipeline_mode<synchronous>, transform_indices = @transform_31, window_bounds = array<i64: 1, 32>}, {transform_indices = @transform_32, window_bounds = array<i64: 8, 32>}, {transform_indices = @transform_33, window_bounds = array<i64: 8, 4>}]} {
    %c0 = arith.constant 0 : index
    %c0_0 = arith.constant 0 : index
    %0 = vector.load %arg1[%c0, %c0_0] : memref<8x32xf32, #tpu.memory_space<vmem>>, vector<8x32xf32>
    %c0_1 = arith.constant 0 : index
    %c0_2 = arith.constant 0 : index
    %1 = vector.load %arg2[%c0_1, %c0_2] : memref<1x32xf32, #tpu.memory_space<vmem>>, vector<1x32xf32>
    %c0_3 = arith.constant 0 : index
    %c0_4 = arith.constant 0 : index
    %2 = vector.load %arg3[%c0_3, %c0_4] : memref<1x32xf32, #tpu.memory_space<vmem>>, vector<1x32xf32>
    %cst = arith.constant dense<0.000000e+00> : vector<8xf32>
    %3 = vector.multi_reduction <add>, %0, %cst [1] : vector<8x32xf32> to vector<8xf32>
    %4 = vector.shape_cast %3 : vector<8xf32> to vector<8x1xf32>
    %cst_5 = arith.constant 3.200000e+01 : f32
    %5 = vector.broadcast %cst_5 : f32 to vector<8x1xf32>
    %6 = arith.divf %4, %5 : vector<8x1xf32>
    %7 = vector.broadcast %6 : vector<8x1xf32> to vector<8x32xf32>
    %8 = arith.subf %0, %7 : vector<8x32xf32>
    %9 = arith.mulf %8, %8 : vector<8x32xf32>
    %cst_6 = arith.constant dense<0.000000e+00> : vector<8xf32>
    %10 = vector.multi_reduction <add>, %9, %cst_6 [1] : vector<8x32xf32> to vector<8xf32>
    %11 = vector.shape_cast %10 : vector<8xf32> to vector<8x1xf32>
    %cst_7 = arith.constant 3.200000e+01 : f32
    %12 = vector.broadcast %cst_7 : f32 to vector<8x1xf32>
    %13 = arith.divf %11, %12 : vector<8x1xf32>
    %14 = vector.broadcast %6 : vector<8x1xf32> to vector<8x32xf32>
    %15 = arith.subf %0, %14 : vector<8x32xf32>
    %cst_8 = arith.constant 9.99999974E-6 : f32
    %16 = vector.broadcast %cst_8 : f32 to vector<8x1xf32>
    %17 = arith.addf %13, %16 : vector<8x1xf32>
    %18 = math.rsqrt %17 : vector<8x1xf32>
    %19 = vector.broadcast %18 : vector<8x1xf32> to vector<8x32xf32>
    %20 = arith.mulf %15, %19 : vector<8x32xf32>
    %21 = vector.broadcast %1 : vector<1x32xf32> to vector<8x32xf32>
    %22 = arith.mulf %20, %21 : vector<8x32xf32>
    %23 = vector.broadcast %2 : vector<1x32xf32> to vector<8x32xf32>
    %24 = arith.addf %22, %23 : vector<8x32xf32>
    %c0_9 = arith.constant 0 : index
    %c0_10 = arith.constant 0 : index
    %25 = vector.load %arg4[%c0_9, %c0_10] : memref<32x4xf32, #tpu.memory_space<vmem>>, vector<32x4xf32>
    %cst_11 = arith.constant dense<0.000000e+00> : vector<8x4xf32>
    %26 = tpu.matmul %24, %25, %cst_11 {dimension_numbers = #tpu.dot_dimension_numbers<[1], [0], [0], [1], [0, 0, 1, 1], [], []>} : vector<8x32xf32>, vector<32x4xf32>, vector<8x4xf32> -> vector<8x4xf32>
    %c0_12 = arith.constant 0 : index
    %c0_13 = arith.constant 0 : index
    %27 = vector.load %arg34[%c0_12, %c0_13] : memref<8x4xf32, #tpu.memory_space<vmem>>, vector<8x4xf32>
    tpu.vector_store %arg34[%c0_12, %c0_13], %26 {strides = array<i32>} : memref<8x4xf32, #tpu.memory_space<vmem>>, vector<8x4xf32>,
    %cst_14 = arith.constant dense<0xFF800000> : vector<8xf32>
    %28 = vector.multi_reduction <maximumf>, %26, %cst_14 [1] : vector<8x4xf32> to vector<8xf32>
    %29 = vector.shape_cast %28 : vector<8xf32> to vector<8x1xf32>
    %30 = vector.broadcast %29 : vector<8x1xf32> to vector<8x4xf32>
    %31 = arith.subf %26, %30 : vector<8x4xf32>
    %32 = math.exp %31 : vector<8x4xf32>
    %cst_15 = arith.constant dense<0.000000e+00> : vector<8xf32>
    %33 = vector.multi_reduction <add>, %32, %cst_15 [1] : vector<8x4xf32> to vector<8xf32>
    %34 = vector.shape_cast %33 : vector<8xf32> to vector<8x1xf32>
    %35 = vector.broadcast %34 : vector<8x1xf32> to vector<8x4xf32>
    %36 = arith.divf %32, %35 : vector<8x4xf32>
    %37 = tpu.iota {dimensions = array<i32: 1>} : vector<8x4xi32>
    %cst_16 = arith.constant 0.000000e+00 : f32
    %38 = vector.broadcast %cst_16 : f32 to vector<8x4xf32>
    %cst_17 = arith.constant dense<0xFF800000> : vector<8xf32>
    %39 = vector.multi_reduction <maximumf>, %36, %cst_17 [1] : vector<8x4xf32> to vector<8xf32>
    %40 = vector.shape_cast %39 : vector<8xf32> to vector<8x1xf32>
    %41 = vector.broadcast %40 : vector<8x1xf32> to vector<8x4xf32>
    %42 = arith.cmpf oeq, %36, %41 : vector<8x4xf32>
    %c4_i32 = arith.constant 4 : i32
    %43 = vector.broadcast %c4_i32 : i32 to vector<8x4xi32>
    %44 = arith.select %42, %37, %43 : vector<8x4xi1>, vector<8x4xi32>
    %cst_18 = arith.constant dense<2147483647> : vector<8xi32>
    %45 = vector.multi_reduction <minsi>, %44, %cst_18 [1] : vector<8x4xi32> to vector<8xi32>
    %46 = vector.shape_cast %45 : vector<8xi32> to vector<8x1xi32>
    %47 = vector.broadcast %46 : vector<8x1xi32> to vector<8x4xi32>
    %48 = arith.cmpi eq, %37, %47 : vector<8x4xi32>
    %cst_19 = arith.constant 1.000000e+00 : f32
    %49 = vector.broadcast %cst_19 : f32 to vector<8x4xf32>
    %50 = arith.select %48, %49, %38 : vector<8x4xi1>, vector<8x4xf32>
    %cst_20 = arith.constant 0xFF800000 : f32
    %51 = vector.broadcast %cst_20 : f32 to vector<8x4xf32>
    %52 = arith.select %48, %51, %36 : vector<8x4xi1>, vector<8x4xf32>
    %cst_21 = arith.constant dense<0xFF800000> : vector<8xf32>
    %53 = vector.multi_reduction <maximumf>, %52, %cst_21 [1] : vector<8x4xf32> to vector<8xf32>
    %54 = vector.shape_cast %53 : vector<8xf32> to vector<8x1xf32>
    %55 = vector.broadcast %54 : vector<8x1xf32> to vector<8x4xf32>
    %56 = arith.cmpf oeq, %52, %55 : vector<8x4xf32>
    %c4_i32_22 = arith.constant 4 : i32
    %57 = vector.broadcast %c4_i32_22 : i32 to vector<8x4xi32>
    %58 = arith.select %56, %37, %57 : vector<8x4xi1>, vector<8x4xi32>
    %cst_23 = arith.constant dense<2147483647> : vector<8xi32>
    %59 = vector.multi_reduction <minsi>, %58, %cst_23 [1] : vector<8x4xi32> to vector<8xi32>
    %60 = vector.shape_cast %59 : vector<8xi32> to vector<8x1xi32>
    %61 = vector.broadcast %60 : vector<8x1xi32> to vector<8x4xi32>
    %62 = arith.cmpi eq, %37, %61 : vector<8x4xi32>
    %cst_24 = arith.constant 1.000000e+00 : f32
    %63 = vector.broadcast %cst_24 : f32 to vector<8x4xf32>
    %64 = arith.select %62, %63, %50 : vector<8x4xi1>, vector<8x4xf32>
    %65 = arith.mulf %36, %64 : vector<8x4xf32>
    %cst_25 = arith.constant dense<0.000000e+00> : vector<8xf32>
    %66 = vector.multi_reduction <add>, %65, %cst_25 [1] : vector<8x4xf32> to vector<8xf32>
    %67 = vector.shape_cast %66 : vector<8xf32> to vector<8x1xf32>
    %68 = vector.broadcast %67 : vector<8x1xf32> to vector<8x4xf32>
    %69 = arith.divf %65, %68 : vector<8x4xf32>
    %70 = arith.truncf %24 : vector<8x32xf32> to vector<8x32xbf16>
    %c0_26 = arith.constant 0 : index
    %c0_27 = arith.constant 0 : index
    %71 = vector.load %arg5[%c0_26, %c0_27] : memref<32x64xbf16, #tpu.memory_space<vmem>>, vector<32x64xbf16>
    %c0_28 = arith.constant 0 : index
    %c0_29 = arith.constant 0 : index
    %72 = vector.load %arg6[%c0_28, %c0_29] : memref<1x64xf32, #tpu.memory_space<vmem>>, vector<1x64xf32>
    %c0_30 = arith.constant 0 : index
    %c0_31 = arith.constant 0 : index
    %73 = vector.load %arg7[%c0_30, %c0_31] : memref<64x64xbf16, #tpu.memory_space<vmem>>, vector<64x64xbf16>
    %c0_32 = arith.constant 0 : index
    %c0_33 = arith.constant 0 : index
    %74 = vector.load %arg8[%c0_32, %c0_33] : memref<1x64xf32, #tpu.memory_space<vmem>>, vector<1x64xf32>
    %c0_34 = arith.constant 0 : index
    %c0_35 = arith.constant 0 : index
    %75 = vector.load %arg9[%c0_34, %c0_35] : memref<1x64xf32, #tpu.memory_space<vmem>>, vector<1x64xf32>
    %c0_36 = arith.constant 0 : index
    %c0_37 = arith.constant 0 : index
    %76 = vector.load %arg10[%c0_36, %c0_37] : memref<1x64xf32, #tpu.memory_space<vmem>>, vector<1x64xf32>
    %c0_38 = arith.constant 0 : index
    %c0_39 = arith.constant 0 : index
    %77 = vector.load %arg11[%c0_38, %c0_39] : memref<64x32xbf16, #tpu.memory_space<vmem>>, vector<64x32xbf16>
    %c0_40 = arith.constant 0 : index
    %c0_41 = arith.constant 0 : index
    %78 = vector.load %arg12[%c0_40, %c0_41] : memref<1x32xf32, #tpu.memory_space<vmem>>, vector<1x32xf32>
    %cst_42 = arith.constant dense<0.000000e+00> : vector<8x64xf32>
    %79 = tpu.matmul %70, %71, %cst_42 {dimension_numbers = #tpu.dot_dimension_numbers<[1], [0], [0], [1], [0, 0, 1, 1], [], []>} : vector<8x32xbf16>, vector<32x64xbf16>, vector<8x64xf32> -> vector<8x64xf32>
    %80 = vector.broadcast %72 : vector<1x64xf32> to vector<8x64xf32>
    %81 = arith.addf %79, %80 : vector<8x64xf32>
    %cst_43 = arith.constant 5.000000e-01 : f32
    %82 = vector.broadcast %cst_43 : f32 to vector<8x64xf32>
    %83 = arith.mulf %82, %81 : vector<8x64xf32>
    %cst_44 = arith.constant 0.707106769 : f32
    %84 = vector.broadcast %cst_44 : f32 to vector<8x64xf32>
    %85 = arith.mulf %81, %84 : vector<8x64xf32>
    %86 = math.erf %85 : vector<8x64xf32>
    %cst_45 = arith.constant 1.000000e+00 : f32
    %87 = vector.broadcast %cst_45 : f32 to vector<8x64xf32>
    %88 = arith.addf %87, %86 : vector<8x64xf32>
    %89 = arith.mulf %83, %88 : vector<8x64xf32>
    %90 = arith.truncf %89 : vector<8x64xf32> to vector<8x64xbf16>
    %cst_46 = arith.constant dense<0.000000e+00> : vector<8x64xf32>
    %91 = tpu.matmul %90, %73, %cst_46 {dimension_numbers = #tpu.dot_dimension_numbers<[1], [0], [0], [1], [0, 0, 1, 1], [], []>} : vector<8x64xbf16>, vector<64x64xbf16>, vector<8x64xf32> -> vector<8x64xf32>
    %92 = vector.broadcast %74 : vector<1x64xf32> to vector<8x64xf32>
    %93 = arith.addf %91, %92 : vector<8x64xf32>
    %cst_47 = arith.constant dense<0.000000e+00> : vector<8xf32>
    %94 = vector.multi_reduction <add>, %93, %cst_47 [1] : vector<8x64xf32> to vector<8xf32>
    %95 = vector.shape_cast %94 : vector<8xf32> to vector<8x1xf32>
    %cst_48 = arith.constant 6.400000e+01 : f32
    %96 = vector.broadcast %cst_48 : f32 to vector<8x1xf32>
    %97 = arith.divf %95, %96 : vector<8x1xf32>
    %98 = vector.broadcast %97 : vector<8x1xf32> to vector<8x64xf32>
    %99 = arith.subf %93, %98 : vector<8x64xf32>
    %100 = arith.mulf %99, %99 : vector<8x64xf32>
    %cst_49 = arith.constant dense<0.000000e+00> : vector<8xf32>
    %101 = vector.multi_reduction <add>, %100, %cst_49 [1] : vector<8x64xf32> to vector<8xf32>
    %102 = vector.shape_cast %101 : vector<8xf32> to vector<8x1xf32>
    %cst_50 = arith.constant 6.400000e+01 : f32
    %103 = vector.broadcast %cst_50 : f32 to vector<8x1xf32>
    %104 = arith.divf %102, %103 : vector<8x1xf32>
    %105 = vector.broadcast %97 : vector<8x1xf32> to vector<8x64xf32>
    %106 = arith.subf %93, %105 : vector<8x64xf32>
    %cst_51 = arith.constant 9.99999974E-6 : f32
    %107 = vector.broadcast %cst_51 : f32 to vector<8x1xf32>
    %108 = arith.addf %104, %107 : vector<8x1xf32>
    %109 = math.rsqrt %108 : vector<8x1xf32>
    %110 = vector.broadcast %109 : vector<8x1xf32> to vector<8x64xf32>
    %111 = arith.mulf %106, %110 : vector<8x64xf32>
    %112 = vector.broadcast %75 : vector<1x64xf32> to vector<8x64xf32>
    %113 = arith.mulf %111, %112 : vector<8x64xf32>
    %114 = vector.broadcast %76 : vector<1x64xf32> to vector<8x64xf32>
    %115 = arith.addf %113, %114 : vector<8x64xf32>
    %cst_52 = arith.constant 5.000000e-01 : f32
    %116 = vector.broadcast %cst_52 : f32 to vector<8x64xf32>
    %117 = arith.mulf %116, %115 : vector<8x64xf32>
    %cst_53 = arith.constant 0.707106769 : f32
    %118 = vector.broadcast %cst_53 : f32 to vector<8x64xf32>
    %119 = arith.mulf %115, %118 : vector<8x64xf32>
    %120 = math.erf %119 : vector<8x64xf32>
    %cst_54 = arith.constant 1.000000e+00 : f32
    %121 = vector.broadcast %cst_54 : f32 to vector<8x64xf32>
    %122 = arith.addf %121, %120 : vector<8x64xf32>
    %123 = arith.mulf %117, %122 : vector<8x64xf32>
    %124 = arith.truncf %123 : vector<8x64xf32> to vector<8x64xbf16>
    %cst_55 = arith.constant dense<0.000000e+00> : vector<8x32xf32>
    %125 = tpu.matmul %124, %77, %cst_55 {dimension_numbers = #tpu.dot_dimension_numbers<[1], [0], [0], [1], [0, 0, 1, 1], [], []>} : vector<8x64xbf16>, vector<64x32xbf16>, vector<8x32xf32> -> vector<8x32xf32>
    %126 = vector.broadcast %78 : vector<1x32xf32> to vector<8x32xf32>
    %127 = arith.addf %125, %126 : vector<8x32xf32>
    %128 = vector.extract_strided_slice %69 {offsets = [0, 0], sizes = [8, 1], strides = [1, 1]} : vector<8x4xf32> to vector<8x1xf32>
    %129 = vector.broadcast %128 : vector<8x1xf32> to vector<8x32xf32>
    %130 = arith.mulf %129, %127 : vector<8x32xf32>
    %131 = arith.addf %0, %130 : vector<8x32xf32>
    %c0_56 = arith.constant 0 : index
    %c0_57 = arith.constant 0 : index
    %132 = vector.load %arg13[%c0_56, %c0_57] : memref<32x64xbf16, #tpu.memory_space<vmem>>, vector<32x64xbf16>
    %c0_58 = arith.constant 0 : index
    %c0_59 = arith.constant 0 : index
    %133 = vector.load %arg14[%c0_58, %c0_59] : memref<1x64xf32, #tpu.memory_space<vmem>>, vector<1x64xf32>
    %c0_60 = arith.constant 0 : index
    %c0_61 = arith.constant 0 : index
    %134 = vector.load %arg15[%c0_60, %c0_61] : memref<64x32xbf16, #tpu.memory_space<vmem>>, vector<64x32xbf16>
    %c0_62 = arith.constant 0 : index
    %c0_63 = arith.constant 0 : index
    %135 = vector.load %arg16[%c0_62, %c0_63] : memref<1x32xf32, #tpu.memory_space<vmem>>, vector<1x32xf32>
    %c0_64 = arith.constant 0 : index
    %c0_65 = arith.constant 0 : index
    %136 = vector.load %arg17[%c0_64, %c0_65] : memref<32x64xbf16, #tpu.memory_space<vmem>>, vector<32x64xbf16>
    %c0_66 = arith.constant 0 : index
    %c0_67 = arith.constant 0 : index
    %137 = vector.load %arg18[%c0_66, %c0_67] : memref<1x64xf32, #tpu.memory_space<vmem>>, vector<1x64xf32>
    %c0_68 = arith.constant 0 : index
    %c0_69 = arith.constant 0 : index
    %138 = vector.load %arg19[%c0_68, %c0_69] : memref<1x64xf32, #tpu.memory_space<vmem>>, vector<1x64xf32>
    %c0_70 = arith.constant 0 : index
    %c0_71 = arith.constant 0 : index
    %139 = vector.load %arg20[%c0_70, %c0_71] : memref<1x64xf32, #tpu.memory_space<vmem>>, vector<1x64xf32>
    %c0_72 = arith.constant 0 : index
    %c0_73 = arith.constant 0 : index
    %140 = vector.load %arg21[%c0_72, %c0_73] : memref<64x32xbf16, #tpu.memory_space<vmem>>, vector<64x32xbf16>
    %c0_74 = arith.constant 0 : index
    %c0_75 = arith.constant 0 : index
    %141 = vector.load %arg22[%c0_74, %c0_75] : memref<1x32xf32, #tpu.memory_space<vmem>>, vector<1x32xf32>
    %cst_76 = arith.constant dense<0.000000e+00> : vector<8x64xf32>
    %142 = tpu.matmul %70, %132, %cst_76 {dimension_numbers = #tpu.dot_dimension_numbers<[1], [0], [0], [1], [0, 0, 1, 1], [], []>} : vector<8x32xbf16>, vector<32x64xbf16>, vector<8x64xf32> -> vector<8x64xf32>
    %143 = vector.broadcast %133 : vector<1x64xf32> to vector<8x64xf32>
    %144 = arith.addf %142, %143 : vector<8x64xf32>
    %cst_77 = arith.constant 5.000000e-01 : f32
    %145 = vector.broadcast %cst_77 : f32 to vector<8x64xf32>
    %146 = arith.mulf %145, %144 : vector<8x64xf32>
    %cst_78 = arith.constant 0.707106769 : f32
    %147 = vector.broadcast %cst_78 : f32 to vector<8x64xf32>
    %148 = arith.mulf %144, %147 : vector<8x64xf32>
    %149 = math.erf %148 : vector<8x64xf32>
    %cst_79 = arith.constant 1.000000e+00 : f32
    %150 = vector.broadcast %cst_79 : f32 to vector<8x64xf32>
    %151 = arith.addf %150, %149 : vector<8x64xf32>
    %152 = arith.mulf %146, %151 : vector<8x64xf32>
    %153 = arith.truncf %152 : vector<8x64xf32> to vector<8x64xbf16>
    %cst_80 = arith.constant dense<0.000000e+00> : vector<8x32xf32>
    %154 = tpu.matmul %153, %134, %cst_80 {dimension_numbers = #tpu.dot_dimension_numbers<[1], [0], [0], [1], [0, 0, 1, 1], [], []>} : vector<8x64xbf16>, vector<64x32xbf16>, vector<8x32xf32> -> vector<8x32xf32>
    %155 = vector.broadcast %135 : vector<1x32xf32> to vector<8x32xf32>
    %156 = arith.addf %154, %155 : vector<8x32xf32>
    %cst_81 = arith.constant 5.000000e-01 : f32
    %157 = vector.broadcast %cst_81 : f32 to vector<8x32xf32>
    %158 = arith.mulf %157, %156 : vector<8x32xf32>
    %cst_82 = arith.constant 0.707106769 : f32
    %159 = vector.broadcast %cst_82 : f32 to vector<8x32xf32>
    %160 = arith.mulf %156, %159 : vector<8x32xf32>
    %161 = math.erf %160 : vector<8x32xf32>
    %cst_83 = arith.constant 1.000000e+00 : f32
    %162 = vector.broadcast %cst_83 : f32 to vector<8x32xf32>
    %163 = arith.addf %162, %161 : vector<8x32xf32>
    %164 = arith.mulf %158, %163 : vector<8x32xf32>
    %165 = arith.truncf %164 : vector<8x32xf32> to vector<8x32xbf16>
    %cst_84 = arith.constant dense<0.000000e+00> : vector<8x64xf32>
    %166 = tpu.matmul %165, %136, %cst_84 {dimension_numbers = #tpu.dot_dimension_numbers<[1], [0], [0], [1], [0, 0, 1, 1], [], []>} : vector<8x32xbf16>, vector<32x64xbf16>, vector<8x64xf32> -> vector<8x64xf32>
    %167 = vector.broadcast %137 : vector<1x64xf32> to vector<8x64xf32>
    %168 = arith.addf %166, %167 : vector<8x64xf32>
    %cst_85 = arith.constant dense<0.000000e+00> : vector<8xf32>
    %169 = vector.multi_reduction <add>, %168, %cst_85 [1] : vector<8x64xf32> to vector<8xf32>
    %170 = vector.shape_cast %169 : vector<8xf32> to vector<8x1xf32>
    %cst_86 = arith.constant 6.400000e+01 : f32
    %171 = vector.broadcast %cst_86 : f32 to vector<8x1xf32>
    %172 = arith.divf %170, %171 : vector<8x1xf32>
    %173 = vector.broadcast %172 : vector<8x1xf32> to vector<8x64xf32>
    %174 = arith.subf %168, %173 : vector<8x64xf32>
    %175 = arith.mulf %174, %174 : vector<8x64xf32>
    %cst_87 = arith.constant dense<0.000000e+00> : vector<8xf32>
    %176 = vector.multi_reduction <add>, %175, %cst_87 [1] : vector<8x64xf32> to vector<8xf32>
    %177 = vector.shape_cast %176 : vector<8xf32> to vector<8x1xf32>
    %cst_88 = arith.constant 6.400000e+01 : f32
    %178 = vector.broadcast %cst_88 : f32 to vector<8x1xf32>
    %179 = arith.divf %177, %178 : vector<8x1xf32>
    %180 = vector.broadcast %172 : vector<8x1xf32> to vector<8x64xf32>
    %181 = arith.subf %168, %180 : vector<8x64xf32>
    %cst_89 = arith.constant 9.99999974E-6 : f32
    %182 = vector.broadcast %cst_89 : f32 to vector<8x1xf32>
    %183 = arith.addf %179, %182 : vector<8x1xf32>
    %184 = math.rsqrt %183 : vector<8x1xf32>
    %185 = vector.broadcast %184 : vector<8x1xf32> to vector<8x64xf32>
    %186 = arith.mulf %181, %185 : vector<8x64xf32>
    %187 = vector.broadcast %138 : vector<1x64xf32> to vector<8x64xf32>
    %188 = arith.mulf %186, %187 : vector<8x64xf32>
    %189 = vector.broadcast %139 : vector<1x64xf32> to vector<8x64xf32>
    %190 = arith.addf %188, %189 : vector<8x64xf32>
    %191 = arith.truncf %190 : vector<8x64xf32> to vector<8x64xbf16>
    %cst_90 = arith.constant dense<0.000000e+00> : vector<8x32xf32>
    %192 = tpu.matmul %191, %140, %cst_90 {dimension_numbers = #tpu.dot_dimension_numbers<[1], [0], [0], [1], [0, 0, 1, 1], [], []>} : vector<8x64xbf16>, vector<64x32xbf16>, vector<8x32xf32> -> vector<8x32xf32>
    %193 = vector.broadcast %141 : vector<1x32xf32> to vector<8x32xf32>
    %194 = arith.addf %192, %193 : vector<8x32xf32>
    %195 = vector.extract_strided_slice %69 {offsets = [0, 1], sizes = [8, 1], strides = [1, 1]} : vector<8x4xf32> to vector<8x1xf32>
    %196 = vector.broadcast %195 : vector<8x1xf32> to vector<8x32xf32>
    %197 = arith.mulf %196, %194 : vector<8x32xf32>
    %198 = arith.addf %131, %197 : vector<8x32xf32>
    %c0_91 = arith.constant 0 : index
    %c0_92 = arith.constant 0 : index
    %199 = vector.load %arg23[%c0_91, %c0_92] : memref<32x64xbf16, #tpu.memory_space<vmem>>, vector<32x64xbf16>
    %c0_93 = arith.constant 0 : index
    %c0_94 = arith.constant 0 : index
    %200 = vector.load %arg24[%c0_93, %c0_94] : memref<1x64xf32, #tpu.memory_space<vmem>>, vector<1x64xf32>
    %c0_95 = arith.constant 0 : index
    %c0_96 = arith.constant 0 : index
    %201 = vector.load %arg25[%c0_95, %c0_96] : memref<64x64xbf16, #tpu.memory_space<vmem>>, vector<64x64xbf16>
    %c0_97 = arith.constant 0 : index
    %c0_98 = arith.constant 0 : index
    %202 = vector.load %arg26[%c0_97, %c0_98] : memref<1x64xf32, #tpu.memory_space<vmem>>, vector<1x64xf32>
    %c0_99 = arith.constant 0 : index
    %c0_100 = arith.constant 0 : index
    %203 = vector.load %arg27[%c0_99, %c0_100] : memref<64x32xbf16, #tpu.memory_space<vmem>>, vector<64x32xbf16>
    %c0_101 = arith.constant 0 : index
    %c0_102 = arith.constant 0 : index
    %204 = vector.load %arg28[%c0_101, %c0_102] : memref<1x32xf32, #tpu.memory_space<vmem>>, vector<1x32xf32>
    %cst_103 = arith.constant dense<0.000000e+00> : vector<8x64xf32>
    %205 = tpu.matmul %70, %199, %cst_103 {dimension_numbers = #tpu.dot_dimension_numbers<[1], [0], [0], [1], [0, 0, 1, 1], [], []>} : vector<8x32xbf16>, vector<32x64xbf16>, vector<8x64xf32> -> vector<8x64xf32>
    %206 = vector.broadcast %200 : vector<1x64xf32> to vector<8x64xf32>
    %207 = arith.addf %205, %206 : vector<8x64xf32>
    %cst_104 = arith.constant 5.000000e-01 : f32
    %208 = vector.broadcast %cst_104 : f32 to vector<8x64xf32>
    %209 = arith.mulf %208, %207 : vector<8x64xf32>
    %cst_105 = arith.constant 0.707106769 : f32
    %210 = vector.broadcast %cst_105 : f32 to vector<8x64xf32>
    %211 = arith.mulf %207, %210 : vector<8x64xf32>
    %212 = math.erf %211 : vector<8x64xf32>
    %cst_106 = arith.constant 1.000000e+00 : f32
    %213 = vector.broadcast %cst_106 : f32 to vector<8x64xf32>
    %214 = arith.addf %213, %212 : vector<8x64xf32>
    %215 = arith.mulf %209, %214 : vector<8x64xf32>
    %216 = arith.truncf %215 : vector<8x64xf32> to vector<8x64xbf16>
    %cst_107 = arith.constant dense<0.000000e+00> : vector<8x64xf32>
    %217 = tpu.matmul %216, %201, %cst_107 {dimension_numbers = #tpu.dot_dimension_numbers<[1], [0], [0], [1], [0, 0, 1, 1], [], []>} : vector<8x64xbf16>, vector<64x64xbf16>, vector<8x64xf32> -> vector<8x64xf32>
    %218 = vector.broadcast %202 : vector<1x64xf32> to vector<8x64xf32>
    %219 = arith.addf %217, %218 : vector<8x64xf32>
    %cst_108 = arith.constant 5.000000e-01 : f32
    %220 = vector.broadcast %cst_108 : f32 to vector<8x64xf32>
    %221 = arith.mulf %220, %219 : vector<8x64xf32>
    %cst_109 = arith.constant 0.707106769 : f32
    %222 = vector.broadcast %cst_109 : f32 to vector<8x64xf32>
    %223 = arith.mulf %219, %222 : vector<8x64xf32>
    %224 = math.erf %223 : vector<8x64xf32>
    %cst_110 = arith.constant 1.000000e+00 : f32
    %225 = vector.broadcast %cst_110 : f32 to vector<8x64xf32>
    %226 = arith.addf %225, %224 : vector<8x64xf32>
    %227 = arith.mulf %221, %226 : vector<8x64xf32>
    %228 = arith.truncf %227 : vector<8x64xf32> to vector<8x64xbf16>
    %cst_111 = arith.constant dense<0.000000e+00> : vector<8x32xf32>
    %229 = tpu.matmul %228, %203, %cst_111 {dimension_numbers = #tpu.dot_dimension_numbers<[1], [0], [0], [1], [0, 0, 1, 1], [], []>} : vector<8x64xbf16>, vector<64x32xbf16>, vector<8x32xf32> -> vector<8x32xf32>
    %230 = vector.broadcast %204 : vector<1x32xf32> to vector<8x32xf32>
    %231 = arith.addf %229, %230 : vector<8x32xf32>
    %232 = vector.extract_strided_slice %69 {offsets = [0, 2], sizes = [8, 1], strides = [1, 1]} : vector<8x4xf32> to vector<8x1xf32>
    %233 = vector.broadcast %232 : vector<8x1xf32> to vector<8x32xf32>
    %234 = arith.mulf %233, %231 : vector<8x32xf32>
    %235 = arith.addf %198, %234 : vector<8x32xf32>
    %c0_112 = arith.constant 0 : index
    %c0_113 = arith.constant 0 : index
    %236 = vector.load %arg29[%c0_112, %c0_113] : memref<32x64xbf16, #tpu.memory_space<vmem>>, vector<32x64xbf16>
    %c0_114 = arith.constant 0 : index
    %c0_115 = arith.constant 0 : index
    %237 = vector.load %arg30[%c0_114, %c0_115] : memref<1x64xf32, #tpu.memory_space<vmem>>, vector<1x64xf32>
    %c0_116 = arith.constant 0 : index
    %c0_117 = arith.constant 0 : index
    %238 = vector.load %arg31[%c0_116, %c0_117] : memref<64x32xbf16, #tpu.memory_space<vmem>>, vector<64x32xbf16>
    %c0_118 = arith.constant 0 : index
    %c0_119 = arith.constant 0 : index
    %239 = vector.load %arg32[%c0_118, %c0_119] : memref<1x32xf32, #tpu.memory_space<vmem>>, vector<1x32xf32>
    %cst_120 = arith.constant dense<0.000000e+00> : vector<8x64xf32>
    %240 = tpu.matmul %70, %236, %cst_120 {dimension_numbers = #tpu.dot_dimension_numbers<[1], [0], [0], [1], [0, 0, 1, 1], [], []>} : vector<8x32xbf16>, vector<32x64xbf16>, vector<8x64xf32> -> vector<8x64xf32>
    %241 = vector.broadcast %237 : vector<1x64xf32> to vector<8x64xf32>
    %242 = arith.addf %240, %241 : vector<8x64xf32>
    %cst_121 = arith.constant 5.000000e-01 : f32
    %243 = vector.broadcast %cst_121 : f32 to vector<8x64xf32>
    %244 = arith.mulf %243, %242 : vector<8x64xf32>
    %cst_122 = arith.constant 0.707106769 : f32
    %245 = vector.broadcast %cst_122 : f32 to vector<8x64xf32>
    %246 = arith.mulf %242, %245 : vector<8x64xf32>
    %247 = math.erf %246 : vector<8x64xf32>
    %cst_123 = arith.constant 1.000000e+00 : f32
    %248 = vector.broadcast %cst_123 : f32 to vector<8x64xf32>
    %249 = arith.addf %248, %247 : vector<8x64xf32>
    %250 = arith.mulf %244, %249 : vector<8x64xf32>
    %251 = arith.truncf %250 : vector<8x64xf32> to vector<8x64xbf16>
    %cst_124 = arith.constant dense<0.000000e+00> : vector<8x32xf32>
    %252 = tpu.matmul %251, %238, %cst_124 {dimension_numbers = #tpu.dot_dimension_numbers<[1], [0], [0], [1], [0, 0, 1, 1], [], []>} : vector<8x64xbf16>, vector<64x32xbf16>, vector<8x32xf32> -> vector<8x32xf32>
    %253 = vector.broadcast %239 : vector<1x32xf32> to vector<8x32xf32>
    %254 = arith.addf %252, %253 : vector<8x32xf32>
    %255 = vector.extract_strided_slice %69 {offsets = [0, 3], sizes = [8, 1], strides = [1, 1]} : vector<8x4xf32> to vector<8x1xf32>
    %256 = vector.broadcast %255 : vector<8x1xf32> to vector<8x32xf32>
    %257 = arith.mulf %256, %254 : vector<8x32xf32>
    %258 = arith.addf %235, %257 : vector<8x32xf32>
    %c0_125 = arith.constant 0 : index
    %c0_126 = arith.constant 0 : index
    %259 = vector.load %arg33[%c0_125, %c0_126] : memref<8x32xf32, #tpu.memory_space<vmem>>, vector<8x32xf32>
    tpu.vector_store %arg33[%c0_125, %c0_126], %258 {strides = array<i32>} : memref<8x32xf32, #tpu.memory_space<vmem>>, vector<8x32xf32>,
    return
  }
  func.func @transform_0(%arg0: i32) -> (i32, i32) {
    %c0_i32 = arith.constant 0 : i32
    %c0_i32_0 = arith.constant 0 : i32
    return %arg0, %c0_i32 : i32, i32
  }
  func.func @transform_1(%arg0: i32) -> (i32, i32) {
    %c0_i32 = arith.constant 0 : i32
    %c0_i32_0 = arith.constant 0 : i32
    %c0_i32_1 = arith.constant 0 : i32
    return %c0_i32, %c0_i32_0 : i32, i32
  }
  func.func @transform_2(%arg0: i32) -> (i32, i32) {
    %c0_i32 = arith.constant 0 : i32
    %c0_i32_0 = arith.constant 0 : i32
    %c0_i32_1 = arith.constant 0 : i32
    return %c0_i32, %c0_i32_0 : i32, i32
  }
  func.func @transform_3(%arg0: i32) -> (i32, i32) {
    %c0_i32 = arith.constant 0 : i32
    %c0_i32_0 = arith.constant 0 : i32
    %c0_i32_1 = arith.constant 0 : i32
    return %c0_i32, %c0_i32_0 : i32, i32
  }
  func.func @transform_4(%arg0: i32) -> (i32, i32) {
    %c0_i32 = arith.constant 0 : i32
    %c0_i32_0 = arith.constant 0 : i32
    %c0_i32_1 = arith.constant 0 : i32
    return %c0_i32, %c0_i32_0 : i32, i32
  }
  func.func @transform_5(%arg0: i32) -> (i32, i32) {
    %c0_i32 = arith.constant 0 : i32
    %c0_i32_0 = arith.constant 0 : i32
    %c0_i32_1 = arith.constant 0 : i32
    return %c0_i32, %c0_i32_0 : i32, i32
  }
  func.func @transform_6(%arg0: i32) -> (i32, i32) {
    %c0_i32 = arith.constant 0 : i32
    %c0_i32_0 = arith.constant 0 : i32
    %c0_i32_1 = arith.constant 0 : i32
    return %c0_i32, %c0_i32_0 : i32, i32
  }
  func.func @transform_7(%arg0: i32) -> (i32, i32) {
    %c0_i32 = arith.constant 0 : i32
    %c0_i32_0 = arith.constant 0 : i32
    %c0_i32_1 = arith.constant 0 : i32
    return %c0_i32, %c0_i32_0 : i32, i32
  }
  func.func @transform_8(%arg0: i32) -> (i32, i32) {
    %c0_i32 = arith.constant 0 : i32
    %c0_i32_0 = arith.constant 0 : i32
    %c0_i32_1 = arith.constant 0 : i32
    return %c0_i32, %c0_i32_0 : i32, i32
  }
  func.func @transform_9(%arg0: i32) -> (i32, i32) {
    %c0_i32 = arith.constant 0 : i32
    %c0_i32_0 = arith.constant 0 : i32
    %c0_i32_1 = arith.constant 0 : i32
    return %c0_i32, %c0_i32_0 : i32, i32
  }
  func.func @transform_10(%arg0: i32) -> (i32, i32) {
    %c0_i32 = arith.constant 0 : i32
    %c0_i32_0 = arith.constant 0 : i32
    %c0_i32_1 = arith.constant 0 : i32
    return %c0_i32, %c0_i32_0 : i32, i32
  }
  func.func @transform_11(%arg0: i32) -> (i32, i32) {
    %c0_i32 = arith.constant 0 : i32
    %c0_i32_0 = arith.constant 0 : i32
    %c0_i32_1 = arith.constant 0 : i32
    return %c0_i32, %c0_i32_0 : i32, i32
  }
  func.func @transform_12(%arg0: i32) -> (i32, i32) {
    %c0_i32 = arith.constant 0 : i32
    %c0_i32_0 = arith.constant 0 : i32
    %c0_i32_1 = arith.constant 0 : i32
    return %c0_i32, %c0_i32_0 : i32, i32
  }
  func.func @transform_13(%arg0: i32) -> (i32, i32) {
    %c0_i32 = arith.constant 0 : i32
    %c0_i32_0 = arith.constant 0 : i32
    %c0_i32_1 = arith.constant 0 : i32
    return %c0_i32, %c0_i32_0 : i32, i32
  }
  func.func @transform_14(%arg0: i32) -> (i32, i32) {
    %c0_i32 = arith.constant 0 : i32
    %c0_i32_0 = arith.constant 0 : i32
    %c0_i32_1 = arith.constant 0 : i32
    return %c0_i32, %c0_i32_0 : i32, i32
  }
  func.func @transform_15(%arg0: i32) -> (i32, i32) {
    %c0_i32 = arith.constant 0 : i32
    %c0_i32_0 = arith.constant 0 : i32
    %c0_i32_1 = arith.constant 0 : i32
    return %c0_i32, %c0_i32_0 : i32, i32
  }
  func.func @transform_16(%arg0: i32) -> (i32, i32) {
    %c0_i32 = arith.constant 0 : i32
    %c0_i32_0 = arith.constant 0 : i32
    %c0_i32_1 = arith.constant 0 : i32
    return %c0_i32, %c0_i32_0 : i32, i32
  }
  func.func @transform_17(%arg0: i32) -> (i32, i32) {
    %c0_i32 = arith.constant 0 : i32
    %c0_i32_0 = arith.constant 0 : i32
    %c0_i32_1 = arith.constant 0 : i32
    return %c0_i32, %c0_i32_0 : i32, i32
  }
  func.func @transform_18(%arg0: i32) -> (i32, i32) {
    %c0_i32 = arith.constant 0 : i32
    %c0_i32_0 = arith.constant 0 : i32
    %c0_i32_1 = arith.constant 0 : i32
    return %c0_i32, %c0_i32_0 : i32, i32
  }
  func.func @transform_19(%arg0: i32) -> (i32, i32) {
    %c0_i32 = arith.constant 0 : i32
    %c0_i32_0 = arith.constant 0 : i32
    %c0_i32_1 = arith.constant 0 : i32
    return %c0_i32, %c0_i32_0 : i32, i32
  }
  func.func @transform_20(%arg0: i32) -> (i32, i32) {
    %c0_i32 = arith.constant 0 : i32
    %c0_i32_0 = arith.constant 0 : i32
    %c0_i32_1 = arith.constant 0 : i32
    return %c0_i32, %c0_i32_0 : i32, i32
  }
  func.func @transform_21(%arg0: i32) -> (i32, i32) {
    %c0_i32 = arith.constant 0 : i32
    %c0_i32_0 = arith.constant 0 : i32
    %c0_i32_1 = arith.constant 0 : i32
    return %c0_i32, %c0_i32_0 : i32, i32
  }
  func.func @transform_22(%arg0: i32) -> (i32, i32) {
    %c0_i32 = arith.constant 0 : i32
    %c0_i32_0 = arith.constant 0 : i32
    %c0_i32_1 = arith.constant 0 : i32
    return %c0_i32, %c0_i32_0 : i32, i32
  }
  func.func @transform_23(%arg0: i32) -> (i32, i32) {
    %c0_i32 = arith.constant 0 : i32
    %c0_i32_0 = arith.constant 0 : i32
    %c0_i32_1 = arith.constant 0 : i32
    return %c0_i32, %c0_i32_0 : i32, i32
  }
  func.func @transform_24(%arg0: i32) -> (i32, i32) {
    %c0_i32 = arith.constant 0 : i32
    %c0_i32_0 = arith.constant 0 : i32
    %c0_i32_1 = arith.constant 0 : i32
    return %c0_i32, %c0_i32_0 : i32, i32
  }
  func.func @transform_25(%arg0: i32) -> (i32, i32) {
    %c0_i32 = arith.constant 0 : i32
    %c0_i32_0 = arith.constant 0 : i32
    %c0_i32_1 = arith.constant 0 : i32
    return %c0_i32, %c0_i32_0 : i32, i32
  }
  func.func @transform_26(%arg0: i32) -> (i32, i32) {
    %c0_i32 = arith.constant 0 : i32
    %c0_i32_0 = arith.constant 0 : i32
    %c0_i32_1 = arith.constant 0 : i32
    return %c0_i32, %c0_i32_0 : i32, i32
  }
  func.func @transform_27(%arg0: i32) -> (i32, i32) {
    %c0_i32 = arith.constant 0 : i32
    %c0_i32_0 = arith.constant 0 : i32
    %c0_i32_1 = arith.constant 0 : i32
    return %c0_i32, %c0_i32_0 : i32, i32
  }
  func.func @transform_28(%arg0: i32) -> (i32, i32) {
    %c0_i32 = arith.constant 0 : i32
    %c0_i32_0 = arith.constant 0 : i32
    %c0_i32_1 = arith.constant 0 : i32
    return %c0_i32, %c0_i32_0 : i32, i32
  }
  func.func @transform_29(%arg0: i32) -> (i32, i32) {
    %c0_i32 = arith.constant 0 : i32
    %c0_i32_0 = arith.constant 0 : i32
    %c0_i32_1 = arith.constant 0 : i32
    return %c0_i32, %c0_i32_0 : i32, i32
  }
  func.func @transform_30(%arg0: i32) -> (i32, i32) {
    %c0_i32 = arith.constant 0 : i32
    %c0_i32_0 = arith.constant 0 : i32
    %c0_i32_1 = arith.constant 0 : i32
    return %c0_i32, %c0_i32_0 : i32, i32
  }
  func.func @transform_31(%arg0: i32) -> (i32, i32) {
    %c0_i32 = arith.constant 0 : i32
    %c0_i32_0 = arith.constant 0 : i32
    %c0_i32_1 = arith.constant 0 : i32
    return %c0_i32, %c0_i32_0 : i32, i32
  }
  func.func @transform_32(%arg0: i32) -> (i32, i32) {
    %c0_i32 = arith.constant 0 : i32
    %c0_i32_0 = arith.constant 0 : i32
    return %arg0, %c0_i32 : i32, i32
  }
  func.func @transform_33(%arg0: i32) -> (i32, i32) {
    %c0_i32 = arith.constant 0 : i32
    %c0_i32_0 = arith.constant 0 : i32
    return %arg0, %c0_i32 : i32, i32
  }
}

</mosaic_0001>

<bundles_post_ra>
// kernel: moe_forward_pallas.1
= control target key start
LH: loop header
LB: loop body
LE: loop exit
PB: predicated region body
PF: predicated region fallthrough
CT: control target
= control target key end

     0   :  { %s2847_s6 = smov 1   ;;  %s2848_s10 = smov 2   ;;  %s3355_s0 = inlined_call_operand.smem [shape: u32[34], index: -1, kind: input, shape index: {}] }
   0x1   :  { %s2896_s5 = sld [smem:[%s3355_s0]]   ;;  %s2849_s14 = smov 3  }
   0x2   :  { %s2901_s9 = sld [smem:[%s3355_s0 + %s2847_s6]]   ;;  %s2850_s18 = smov 4  }
   0x3   :  { %s2906_s13 = sld [smem:[%s3355_s0 + %s2848_s10]]   ;;  %s2851_s22 = smov 5  }
   0x4   :  { %s2911_s17 = sld [smem:[%s3355_s0 + %s2849_s14]]   ;;  %s2852_s26 = smov 6  }
   0x5   :  { %s2916_s21 = sld [smem:[%s3355_s0 + %s2850_s18]]   ;;  %s2853_s30 = smov 7  }
   0x6   :  { %s2921_s25 = sld [smem:[%s3355_s0 + %s2851_s22]]   ;;  %s2854_s4 = smov 8  }
   0x7   :  { %3366 = sst [smem:[#allocation5_spill]] %s2896_s5  ;;  %s2855_s10 = smov 9  }
   0x8   :  { %3367 = sst [smem:[#allocation6_spill]] %s2901_s9  ;;  %s2856_s15 = smov 10  }
   0x9   :  { %3368 = sst [smem:[#allocation7_spill]] %s2906_s13  ;;  %s2857_s20 = smov 11  }
   0xa   :  { %s2926_s29 = sld [smem:[%s3355_s0 + %s2852_s26]]   ;;  %s2858_s26 = smov 12  }
   0xb   :  { %s2931_s3 = sld [smem:[%s3355_s0 + %s2853_s30]]   ;;  %s2859_s1 = smov 13  }
   0xc   :  { %s2936_s8 = sld [smem:[%s3355_s0 + %s2854_s4]]   ;;  %s2860_s7 = smov 14  }
   0xd   :  { %s2941_s14 = sld [smem:[%s3355_s0 + %s2855_s10]]   ;;  %s2862_s22 = smov 16  }
   0xe   :  { %s2946_s19 = sld [smem:[%s3355_s0 + %s2856_s15]]   ;;  %s2861_s15 = smov 15  }
   0xf   :  { %s2951_s24 = sld [smem:[%s3355_s0 + %s2857_s20]]   ;;  %s2863_s28 = smov 17  }
  0x10   :  { %s2956_s30 = sld [smem:[%s3355_s0 + %s2858_s26]]  }
  0x11   :  { %3369 = sst [smem:[#allocation8_spill]] %s2931_s3 }
  0x12   :  { %3370 = sst [smem:[#allocation9_spill]] %s2936_s8 }
  0x13   :  { %s2961_s6 = sld [smem:[%s3355_s0 + %s2859_s1]]  }
  0x14   :  { %s2966_s12 = sld [smem:[%s3355_s0 + %s2860_s7]]   ;;  %s2864_s7 = smov 18  }
  0x15   :  { %3371 = sst [smem:[#allocation10_spill]] %s2951_s24 }
  0x16   :  { %s2971_s20 = sld [smem:[%s3355_s0 + %s2861_s15]]   ;;  %s2865_s15 = smov 19  }
  0x17   :  { %s2976_s27 = sld [smem:[%s3355_s0 + %s2862_s22]]   ;;  %s2866_s22 = smov 20  }
  0x18   :  { %s2981_s4 = sld [smem:[%s3355_s0 + %s2863_s28]]   ;;  %s2867_s28 = smov 21  }
  0x19   :  { %3372 = sst [smem:[#allocation11_spill]] %s2961_s6 }
  0x1a   :  { %3373 = sst [smem:[#allocation12_spill]] %s2966_s12 }
  0x1b   :  { %s2986_s24 = sld [smem:[%s3355_s0 + %s2864_s7]]   ;;  %s2868_s7 = smov 22  }
  0x1c   :  { %3374 = sst [smem:[#allocation13_spill]] %s2971_s20 }
  0x1d   :  { %3375 = sst [smem:[#allocation14_spill]] %s2976_s27 }
  0x1e   :  { %3376 = sst [smem:[#allocation15_spill]] %s2981_s4 }
  0x1f   :  { %s2991_s20 = sld [smem:[%s3355_s0 + %s2865_s15]]   ;;  %s2869_s15 = smov 23  }
  0x20   :  { %s2996_s27 = sld [smem:[%s3355_s0 + %s2866_s22]]   ;;  %s2870_s22 = smov 24  }
  0x21   :  { %3377 = sst [smem:[#allocation16_spill]] %s2986_s24 }
  0x22   :  { %s3001_s4 = sld [smem:[%s3355_s0 + %s2867_s28]]   ;;  %s2871_s28 = smov 25  }
  0x23   :  { %s3006_s24 = sld [smem:[%s3355_s0 + %s2868_s7]]   ;;  %s2872_s7 = smov 26  }
  0x25   :  { %3378 = sst [smem:[#allocation17_spill]] %s2991_s20 }
  0x26   :  { %3379 = sst [smem:[#allocation18_spill]] %s2996_s27 }
  0x27   :  { %s3011_s20 = sld [smem:[%s3355_s0 + %s2869_s15]]   ;;  %s2873_s15 = smov 27  }
  0x28   :  { %3380 = sst [smem:[#allocation19_spill]] %s3001_s4 }
  0x29   :  { %3381 = sst [smem:[#allocation20_spill]] %s3006_s24 }
  0x2a   :  { %s3016_s27 = sld [smem:[%s3355_s0 + %s2870_s22]]   ;;  %s2874_s22 = smov 28  }
  0x2b   :  { %s3021_s4 = sld [smem:[%s3355_s0 + %s2871_s28]]   ;;  %s2875_s28 = smov 29  }
  0x2c   :  { %s3026_s24 = sld [smem:[%s3355_s0 + %s2872_s7]]   ;;  %s2876_s7 = smov 30  }
  0x2d   :  { %3382 = sst [smem:[#allocation21_spill]] %s3011_s20 }
  0x2e   :  { %s3031_s20 = sld [smem:[%s3355_s0 + %s2873_s15]]   ;;  %s2877_s15 = smov 31  }
  0x30   :  { %3383 = sst [smem:[#allocation22_spill]] %s3016_s27 }
  0x31   :  { %3384 = sst [smem:[#allocation23_spill]] %s3021_s4 }
  0x32   :  { %3385 = sst [smem:[#allocation24_spill]] %s3026_s24 }
  0x33   :  { %s3036_s27 = sld [smem:[%s3355_s0 + %s2874_s22]]   ;;  %s2878_s22 = smov 32  }
  0x34   :  { %3386 = sst [smem:[#allocation25_spill]] %s3031_s20 }
  0x35   :  { %s3041_s4 = sld [smem:[%s3355_s0 + %s2875_s28]]   ;;  %s2879_s28 = smov 33  }
  0x36   :  { %s3046_s24 = sld [smem:[%s3355_s0 + %s2876_s7]]  }
  0x37   :  { %s3051_s20 = sld [smem:[%s3355_s0 + %s2877_s15]]  }
  0x39   :  { %3387 = sst [smem:[#allocation26_spill]] %s3036_s27 }
  0x3a   :  { %s3056_s27 = sld [smem:[%s3355_s0 + %s2878_s22]]  }
  0x3b   :  { %3388 = sst [smem:[#allocation27_spill]] %s3041_s4 }
  0x3c   :  { %s3061_s4 = sld [smem:[%s3355_s0 + %s2879_s28]]  }
  0x42   :  { %3389 = sst [smem:[#allocation28_spill]] %s3061_s4 }
  0x43   :  { %73 = vsyncpa [#allocation3], 0 }
  0x44   :  { %75 = vsyncpa [#allocation3 + $0x1], 0  ;;  %s3063_s7 = smov 0   ;;  %s3065_s10 = smov 0  }
  0x45   :  { %s3067_s11 = smov 0   ;;  %s3069_s15 = smov 0  }
  0x46 LB: > { %s3390_s12 = sld [smem:[#allocation12_spill]]  ;;  %s3084_s0 = sadd.s32 4294967295, %s2845_s15   ;;  %s2833_s7 = sphi %s3063_s7, %s3416_s7   ;;  %s2845_s15 = sphi %s3069_s15, %s3419_s15   ;;  %s2841_s11 = sphi %s3067_s11, %s3418_s11   ;;  %s2837_s10 = sphi %s3065_s10, %s3417_s10  }
  0x47   : > { %s2359_s16 = sadd.s32 4294967294, %s2845_s15   ;;  %s3088_s18 = sadd.s32 1, %s2845_s15  }
  0x48   : > { %s765_s22 = sadd.s32 1, %s2841_s11  ;;  %s762_s23 = ssub.s32 %s2845_s15, %s3088_s18 }
  0x49   : > { %p775_p0 = scmp.ne.s32.totalorder %s2841_s11, %s2837_s10  ;;  %p763_p1 = scmp.eq.s32.totalorder %s762_s23, 0 }
  0x4a   : > { %p776_p2 = scmp.eq.s32.totalorder %s3084_s0, 1  ;;  %p781_p3 = scmp.ne.s32.totalorder %s2837_s10, %s2833_s7 }
  0x4b   : > { %p782_p4 = scmp.eq.s32.totalorder %s2359_s16, 1  ;;  %p2362_p7 = scmp.ge.s32.totalorder %s2845_s15, 1 }
  0x4c   : > { %s3099_s26 = scalar_select %p763_p1, %s2841_s11, %s765_s22  }
  0x4d   : > { %p3101_p5 = por %p776_p2, %p775_p0  ;;  %p3105_p6 = por %p782_p4, %p781_p3 }
  0x4e   : > { %p926_p8 = scmp.lt.s32.totalorder %s2845_s15, 3 }
  0x50   : > { %p927_p9 = pnand %p2362_p7, %p926_p8 }
  0x51   : > { %s3393_s5 = sld [smem:[#allocation5_spill]] (!%p927_p9)  ;;  %p1013_p10 = scmp.lt.s32.totalorder (!%p927_p9), %s3084_s0, 1  ;;  %vm1025_vm0 = vcmask (!%p927_p9), 261120   ;;  %v1054_v7 = vld [vmem:[%s2911_s17] sm:$0xff] (!%p927_p9)  ;;  %v1055_v8 = vld [vmem:[%s2911_s17 + $0x8] sm:$0xff] (!%p927_p9)  ;;  %v1056_v9 = vld [vmem:[%s2911_s17 + $0x10] sm:$0xff] (!%p927_p9) }
  0x52   : > { %930 = sbr.rel (%p927_p9) target bundleno = 2370 (0x942), region = 148  ;;  %v2880_v10 = vmov (!%p927_p9), 0.0|0.0   ;;  %v2630_v11 = vpack.c.bf16 (!%p927_p9), %v1055_v8, %v1054_v7  ;;  %v1057_v12 = vld [vmem:[%s2911_s17 + $0x18] sm:$0xff] (!%p927_p9)  ;;  %s3394_s9 = sld [smem:[#allocation6_spill]] (!%p927_p9)  ;;  %vm2881_vm1 = vmmov (!%p927_p9), 0   ;;  %v2882_v13 = vmov (!%p927_p9), 0.0  }
  0x53   : > { %2629 = vmatprep.subr.bf16.mxu1 (!%p927_p9), %v2880_v10  ;;  %s3395_s13 = sld [smem:[#allocation7_spill]] (!%p927_p9)  ;;  %2502 = vmatprep.mubr.msk.f32.mxu1 (!%p927_p9), %vm2881_vm1, %v2882_v13  ;;  %v2633_v14 = vpack.c.bf16 (!%p927_p9), %v1057_v12, %v1056_v9  ;;  %v2719_v23 = vld [vmem:[%s2916_s21] sm:$0xff] (!%p927_p9)   ;;  %v2720_v25 = vld [vmem:[%s2916_s21 + $0x8] sm:$0xff] (!%p927_p9)   ;;  %s3396_s4 = sld [smem:[#allocation28_spill]] (!%p927_p9)  ;;  %v2723_v29 = vld [vmem:[%s2926_s29 + $0x10] sm:$0xff] (!%p927_p9)   ;;  %vm1131_vm2 = vcmask (!%p927_p9), 31744  }
  0x54   : > { %2513 = vmatprep.subr.bf16.mxu0 (!%p927_p9), %v2882_v13  ;;  %2521 = vmatprep.mubr.msk.bf16.mxu0 (!%p927_p9), %vm2881_vm1, %v2882_v13  ;;  %v2721_v27 = vld [vmem:[%s2926_s29] sm:$0xff] (!%p927_p9)   ;;  %v2722_v28 = vld [vmem:[%s2926_s29 + $0x8] sm:$0xff] (!%p927_p9)   ;;  %v2724_v30 = vld [vmem:[%s2926_s29 + $0x18] sm:$0xff] (!%p927_p9)   ;;  %s3397_s3 = sld [smem:[#allocation8_spill]] (!%p927_p9)  ;;  %vm1320_vm3 = vcmask (!%p927_p9), 523264   ;;  %s3398_s8 = sld [smem:[#allocation9_spill]] (!%p927_p9) }
  0x55   : > { %2631 = vmatpush3.bf16.msra.mxu1 (!%p927_p9), %v2630_v11  ;;  %2514 = vmatpush3.bf16.msra.mxu0 (!%p927_p9), %v2721_v27  ;;  %v2369_v34 = vld [vmem:[%s2921_s25] ss:$0 sm:$0xff] (!%p927_p9)  ;;  %v2726_v47 = vld [vmem:[%s2956_s30 + $0x8] sm:$0xff] (!%p927_p9)   ;;  %v2729_v8 = vld [vmem:[%s2946_s19 + $0x10] sm:$0xff] (!%p927_p9)   ;;  %s3399_s6 = sld [smem:[#allocation11_spill]] (!%p927_p9) }
  0x56   : > { %2632 = vmatprep.subr.bf16.mxu1 (!%p927_p9), %v2880_v10  ;;  %2515 = vmatprep.subr.bf16.mxu0 (!%p927_p9), %v2882_v13  ;;  %v2725_v45 = vld [vmem:[%s2956_s30] sm:$0xff] (!%p927_p9)   ;;  %v2728_v7 = vld [vmem:[%s2946_s19 + $0x8] sm:$0xff] (!%p927_p9)   ;;  %v2730_v9 = vld [vmem:[%s2946_s19 + $0x18] sm:$0xff] (!%p927_p9)  }
  0x58   : > { %v2366_v19 = vld [vmem:[%s3394_s9] ss:$0 sm:$0xff] (!%p927_p9) }
  0x59   : > { %s3113_s2 = scalar_select %p1013_p10, %s3084_s0, 1  ;;  %2634 = vmatpush3.bf16.msra.mxu1 %v2633_v14  ;;  %v2367_v21 = vld [vmem:[%s3395_s13] ss:$0 sm:$0xff]  ;;  %2516 = vmatpush3.bf16.msra.mxu0 %v2722_v28 }
  0x5a   : > { %2505 = vmatprep.subr.bf16.mxu1 %v2882_v13  ;;  %2517 = vmatprep.subr.bf16.mxu0 %v2882_v13  ;;  %v2373_v48 = vld [vmem:[%s3397_s3] ss:$0 sm:$0xff]  ;;  %s3405_s3 = sld [smem:[#allocation26_spill]] }
  0x5b   : > { %s2364_s16 = sshll.u32 %s3113_s2, 3  ;;  %s3400_s2 = sld [smem:[#allocation20_spill]] }
  0x5c   : > { %s1016_s22 = scalar_lea.vmem %s3393_s5, %s2364_s16  ;;  %s1020_s23 = scalar_lea.vmem %s3396_s4, %s2364_s16 }
  0x5d   : > { %v3119_v0 = vld [vmem:[%s1016_s22] sm:$0xff]  ;;  %2518 = vmatpush3.bf16.msra.mxu0 %v2723_v29  ;;  %s3401_s16 = sld [smem:[#allocation14_spill]]  ;;  %s3410_s4 = sld [smem:[#allocation17_spill]] }
  0x5e   : > { %v1026_v1 = vsel %vm1025_vm0, %v3119_v0, 0.0  ;;  %2519 = vmatprep.subr.bf16.mxu0 %v2882_v13  ;;  %s3402_s22 = sld [smem:[#allocation22_spill]]  ;;  %s3411_s5 = sld [smem:[#allocation24_spill]] }
  0x5f   : > { %1027 = vadd.xlane.f32.xlu0 %v1026_v1 }
  0x61   : > { %2520 = vmatpush3.bf16.msra.mxu0 %v2724_v30 }
  0x62   : > { %2537 = vmatprep.subr.bf16.mxu0 %v2882_v13 }
  0xec   : > { %v1028_v2 = vpop.xlane.xlu0 %1027 }
  0xed   : > { %v1030_v3 = vmul.f32 0.03125, %v1028_v2 }
  0xef   : > { %v1031_v4 = vsub.f32 %v3119_v0, %v1030_v3 }
  0xf1   : > { %v1032_v5 = vmul.f32 %v1031_v4, %v1031_v4 }
  0xf3   : > { %v1033_v6 = vsel %vm1025_vm0, %v1032_v5, 0.0 }
  0xf4   : > { %1034 = vadd.xlane.f32.xlu0 %v1033_v6  ;;  %v2727_v6 = vld [vmem:[%s2946_s19] sm:$0xff]  }
 0x181   : > { %v1035_v15 = vpop.xlane.xlu0 %1034 }
 0x182   : > { %v1036_v16 = vmul.f32 0.03125, %v1035_v15 }
 0x184   : > { %v1037_v17 = vadd.f32 1e-05, %v1036_v16  ;;  %v2379_v16 = vld [vmem:[%s3398_s8] ss:$0 sm:$0xff] }
 0x186   : > { %2757 = vrsqrt.f32 %v1037_v17 }
 0x190   : > { %v2758_v18 = vpop.eup %2757 }
 0x191   : > { %v1039_v20 = vmul.f32 %v2758_v18, %v1031_v4 }
 0x193   : > { %v1046_v22 = vmul.f32 %v2366_v19, %v1039_v20  ;;  %v2380_v20 = vld [vmem:[%s2941_s14] ss:$0 sm:$0xff] }
 0x195   : > { %v1053_v24 = vadd.f32 %v2367_v21, %v1046_v22 }
 0x197   : > { %2503 = vmatmul.mubr.msk.f32.vlgmr.msra.gmra.mrb[0].mxu1 %vm1025_vm0, %v1053_v24  ;;  %v3143_v26 = vpack.c.bf16 %v1053_v24, %v1053_v24 }
 0x198   : > { %2506 = vmatpush3.bf16.msra.mxu1 %v2719_v23  ;;  %2509 = vmatprep.mubr.msk.bf16.mxu1 %vm2881_vm1, %v2882_v13 }
 0x199   : > { %2507 = vmatprep.subr.bf16.mxu1 %v2882_v13 }
 0x19c   : > { %2508 = vmatpush3.bf16.msra.mxu1 %v2720_v25  ;;  %v2387_v25 = vld [vmem:[%s3399_s6] ss:$0 sm:$0xff]  ;;  %s3412_s6 = sld [smem:[#allocation27_spill]] }
 0x19d   : > { %2525 = vmatprep.subr.bf16.mxu1 %v2882_v13 }
 0x19f   : > { %2510 = vmatmul.mubr.msk.bf16.vlgmr.msra.gmra.mrb[4].mxu1 %vm1025_vm0, %v3143_v26 }
 0x1a0   : > { %2533 = vmatprep.mubr.msk.bf16.mxu1 %vm2881_vm1, %v2882_v13  ;;  %2526 = vmatpush3.bf16.msra.mxu1 %v2727_v6 }
 0x1a1   : > { %2527 = vmatprep.subr.bf16.mxu1 %v2882_v13 }
 0x1a4   : > { %2528 = vmatpush3.bf16.msra.mxu1 %v2728_v7 }
 0x1a5   : > { %2529 = vmatprep.subr.bf16.mxu1 %v2882_v13 }
 0x1a8   : > { %2530 = vmatpush3.bf16.msra.mxu1 %v2729_v8 }
 0x1a9   : > { %2531 = vmatprep.subr.bf16.mxu1 %v2882_v13 }
 0x1ac   : > { %2532 = vmatpush3.bf16.msra.mxu1 %v2730_v9 }
 0x1ad   : > { %2545 = vmatprep.subr.bf16.mxu1 %v2882_v13 }
 0x26a   : > { %v1127_v31 = vpop.f32.mrb[0].mxu1 }
 0x26b   : > { %1132 = vst.msk [vmem:[%s1020_s23] sm:$0xff] %vm1131_vm2, %v1127_v31  ;;  %v2504_v32 = vpop.f32.mrb[1].mxu1  ;;  %v1133_v33 = vsel %vm1131_vm2, %v1127_v31, -inf  ;;  %s3403_s23 = sld [smem:[#allocation13_spill]] }
 0x26c   : > { %1134 = vmax.xlane.f32.xlu0 %v1133_v33  ;;  %v2731_v33 = vld [vmem:[%s3390_s12] sm:$0xff]  }
 0x272   : > { %v1278_v35 = vpop.f32.mrb[4].mxu1 }
 0x273   : > { %v1279_v36 = vadd.f32 %v2369_v34, %v1278_v35  ;;  %v2511_v37 = vpop.f32.mrb[5].mxu1  ;;  %v2732_v35 = vld [vmem:[%s3390_s12 + $0x8] sm:$0xff]  }
 0x274   : > { %v1281_v38 = vpop.f32.mrb[6].mxu1  ;;  %v2733_v37 = vld [vmem:[%s3390_s12 + $0x10] sm:$0xff]  }
 0x275   : > { %v1285_v39 = vmul.f32 0.70710677, %v1279_v36  ;;  %v2512_v40 = vpop.f32.mrb[7].mxu1  ;;  %v1284_v42 = vmul.f32 0.5, %v1279_v36 }
 0x276   : > { %v2734_v40 = vld [vmem:[%s3390_s12 + $0x18] sm:$0xff]  }
 0x277   : > { %2759 = verf.f32 %v1285_v39 }
 0x281   : > { %v2760_v41 = vpop.eup %2759 }
 0x282   : > { %v1287_v43 = vadd.f32 1.0, %v2760_v41 }
 0x284   : > { %v1288_v44 = vmul.f32 %v1287_v43, %v1284_v42  ;;  %v2735_v42 = vld [vmem:[%s3400_s2] sm:$0xff]  }
 0x286   : > { %v1289_v46 = vpack.c.bf16 %v1288_v44, %v1288_v44  ;;  %v2736_v44 = vld [vmem:[%s3400_s2 + $0x8] sm:$0xff]   ;;  %s3404_s2 = sld [smem:[#allocation21_spill]] }
 0x288   : > { %2522 = vmatmul.mubr.msk.bf16.vlgmr.msra.gmra.mrb[0].mxu0 %vm1320_vm3, %v1289_v46  ;;  %v2738_v46 = vld [vmem:[%s3402_s22] sm:$0xff]  }
 0x289   : > { %2538 = vmatpush3.bf16.msra.mxu0 %v2725_v45  ;;  %2541 = vmatprep.mubr.msk.bf16.mxu0 %vm2881_vm1, %v2882_v13  ;;  %v2737_v45 = vld [vmem:[%s3401_s16] sm:$0xff]  }
 0x28a   : > { %2539 = vmatprep.subr.bf16.mxu0 %v2882_v13 }
 0x28c   : > { %v2409_v6 = vld [vmem:[%s3404_s2] ss:$0 sm:$0xff]  ;;  %s3406_s2 = sld [smem:[#allocation15_spill]] }
 0x28d   : > { %2540 = vmatpush3.bf16.msra.mxu0 %v2726_v47  ;;  %v1144_v47 = vlaneseq }
 0x28e   : > { %2557 = vmatprep.subr.bf16.mxu0 %v2882_v13 }
 0x290   : > { %2542 = vmatmul.mubr.msk.bf16.vlgmr.msra.gmra.mrb[4].mxu0 %vm1025_vm0, %v3143_v26 }
 0x291   : > { %2561 = vmatprep.mubr.msk.bf16.mxu0 %vm2881_vm1, %v2882_v13  ;;  %2558 = vmatpush3.bf16.msra.mxu0 %v2737_v45 }
 0x292   : > { %2559 = vmatprep.subr.bf16.mxu0 %v2882_v13 }
 0x2f9   : > { %v1135_v59 = vpop.xlane.xlu0 %1134 }
 0x2fa   : > { %v1136_v60 = vsub.f32 %v1127_v31, %v1135_v59 }
 0x2fc   : > { %v1137_v61 = vmul.f32 1.442695, %v1136_v60 }
 0x2fe   : > { %2761 = vpow2.f32 %v1137_v61 }
 0x308   : > { %v2762_v4 = vpop.eup %2761 }
 0x309   : > { %v1139_v5 = vsel %vm1131_vm2, %v2762_v4, 0.0 }
 0x35b   : > { %v1358_v49 = vpop.f32.mrb[0].mxu0 }
 0x35c   : > { %v1359_v50 = vadd.f32 %v2373_v48, %v1358_v49  ;;  %v2523_v51 = vpop.f32.mrb[1].mxu0  ;;  %v2739_v48 = vld [vmem:[%s3401_s16 + $0x8] sm:$0xff]  }
 0x35d   : > { %v1361_v52 = vpop.f32.mrb[2].mxu0  ;;  %v2740_v49 = vld [vmem:[%s3402_s22 + $0x8] sm:$0xff]   ;;  %2560 = vmatpush3.bf16.msra.mxu0 %v2739_v48 }
 0x35e   : > { %v2524_v53 = vpop.f32.mrb[3].mxu0  ;;  %v1364_v54 = vsel %vm1320_vm3, %v1359_v50, 0.0  ;;  %2565 = vmatprep.subr.bf16.mxu0 %v2882_v13  ;;  %v2741_v52 = vld [vmem:[%s3402_s22 + $0x10] sm:$0xff]  }
 0x35f   : > { %1365 = vadd.xlane.f32.xlu1 %v1364_v54 }
 0x363   : > { %v1560_v55 = vpop.f32.mrb[4].mxu0 }
 0x364   : > { %v2543_v56 = vpop.f32.mrb[5].mxu0  ;;  %v1561_v27 = vadd.f32 %v2387_v25, %v1560_v55 }
 0x365   : > { %v1563_v57 = vpop.f32.mrb[6].mxu0  ;;  %v2742_v56 = vld [vmem:[%s3402_s22 + $0x18] sm:$0xff]  }
 0x366   : > { %v2544_v58 = vpop.f32.mrb[7].mxu0  ;;  %v1567_v28 = vmul.f32 0.70710677, %v1561_v27  ;;  %v1566_v39 = vmul.f32 0.5, %v1561_v27  ;;  %v2744_v27 = vld [vmem:[%s3405_s3 + $0x8] sm:$0xff]  }
 0x3ec   : > { %v1366_v62 = vpop.xlane.xlu1 %1365 }
 0x3ed   : > { %v1368_v63 = vmul.f32 0.015625, %v1366_v62  ;;  %v2391_v62 = vld [vmem:[%s3403_s23] ss:$0 sm:$0xff]  ;;  %s3407_s23 = sld [smem:[#allocation18_spill]] }
 0x3ef   : > { %v1369_v1 = vsub.f32 %v1359_v50, %v1368_v63  ;;  %v3222_v50 = vand.u32 127, %v1144_v47 }
 0x3f1   : > { %v1370_v2 = vmul.f32 %v1369_v1, %v1369_v1 }
 0x3f3   : > { %v1371_v3 = vsel %vm1320_vm3, %v1370_v2, 0.0 }
 0x3f4   : > { %1372 = vadd.xlane.f32.xlu1 %v1371_v3 }
 0x3f8   : > { %1140 = vadd.xlane.f32.xlu1 %v1139_v5 }
 0x481   : > { %v1373_v10 = vpop.xlane.xlu1 %1372 }
 0x482   : > { %v1374_v11 = vmul.f32 0.015625, %v1373_v10 }
 0x484   : > { %v1375_v12 = vadd.f32 1e-05, %v1374_v11 }
 0x485   : > { %v1141_v14 = vpop.xlane.xlu1 %1140 }
 0x486   : > { %2763 = vrsqrt.f32 %v1375_v12 }
 0x487   : > { %2765 = vrcp.f32 %v1141_v14 }
 0x490   : > { %v2764_v15 = vpop.eup %2763 }
 0x491   : > { %v2766_v17 = vpop.eup %2765  ;;  %v1377_v18 = vmul.f32 %v2764_v15, %v1369_v1 }
 0x492   : > { %v3188_v19 = vmul.f32 %v2766_v17, %v2762_v4 }
 0x493   : > { %v1384_v21 = vmul.f32 %v2379_v16, %v1377_v18 }
 0x494   : > { %v1146_v22 = vsel %vm1131_vm2, %v3188_v19, -inf }
 0x495   : > { %1147 = vmax.xlane.f32.xlu0 %v1146_v22  ;;  %v1391_v23 = vadd.f32 %v2380_v20, %v1384_v21 }
 0x497   : > { %v1393_v24 = vmul.f32 0.70710677, %v1391_v23  ;;  %v1392_v30 = vmul.f32 0.5, %v1391_v23 }
 0x499   : > { %2767 = verf.f32 %v1393_v24  ;;  %v2743_v24 = vld [vmem:[%s3405_s3] sm:$0xff]   ;;  %s3409_s3 = sld [smem:[#allocation16_spill]] }
 0x49a   : > { %2769 = verf.f32 %v1567_v28 }
 0x4a3   : > { %v2768_v29 = vpop.eup %2767 }
 0x4a4   : > { %v1395_v31 = vadd.f32 1.0, %v2768_v29  ;;  %v2770_v36 = vpop.eup %2769 }
 0x4a5   : > { %v1569_v38 = vadd.f32 1.0, %v2770_v36 }
 0x4a6   : > { %v1396_v32 = vmul.f32 %v1395_v31, %v1392_v30 }
 0x4a7   : > { %v1570_v41 = vmul.f32 %v1569_v38, %v1566_v39  ;;  %v2397_v38 = vld [vmem:[%s3406_s2] ss:$0 sm:$0xff]  ;;  %s3408_s2 = sld [smem:[#allocation23_spill]] }
 0x4a8   : > { %v1397_v34 = vpack.c.bf16 %v1396_v32, %v1396_v32 }
 0x4a9   : > { %v1571_v43 = vpack.c.bf16 %v1570_v41, %v1570_v41 }
 0x4aa   : > { %2534 = vmatmul.mubr.msk.bf16.vlgmr.msra.gmra.mrb[8].mxu1 %vm1320_vm3, %v1397_v34 }
 0x4ab   : > { %2546 = vmatpush3.bf16.msra.mxu1 %v2731_v33  ;;  %2553 = vmatprep.mubr.msk.bf16.mxu1 %vm2881_vm1, %v2882_v13 }
 0x4ac   : > { %2547 = vmatprep.subr.bf16.mxu1 %v2882_v13 }
 0x4af   : > { %2548 = vmatpush3.bf16.msra.mxu1 %v2732_v35 }
 0x4b0   : > { %2549 = vmatprep.subr.bf16.mxu1 %v2882_v13 }
 0x4b3   : > { %2550 = vmatpush3.bf16.msra.mxu1 %v2733_v37 }
 0x4b4   : > { %2551 = vmatprep.subr.bf16.mxu1 %v2882_v13 }
 0x4b7   : > { %2552 = vmatpush3.bf16.msra.mxu1 %v2734_v40 }
 0x4b8   : > { %2577 = vmatprep.subr.bf16.mxu1 %v2882_v13 }
 0x4ba   : > { %2554 = vmatmul.mubr.msk.bf16.vlgmr.msra.gmra.mrb[12].mxu1 %vm1320_vm3, %v1571_v43 }
 0x4bb   : > { %2578 = vmatpush3.bf16.msra.mxu1 %v2735_v42  ;;  %2581 = vmatprep.mubr.msk.bf16.mxu1 %vm2881_vm1, %v2882_v13 }
 0x4bc   : > { %2579 = vmatprep.subr.bf16.mxu1 %v2882_v13 }
 0x4bf   : > { %2580 = vmatpush3.bf16.msra.mxu1 %v2736_v44 }
 0x4c0   : > { %2585 = vmatprep.subr.bf16.mxu1 %v2882_v13 }
 0x4c2   : > { %2582 = vmatmul.mubr.msk.bf16.vlgmr.msra.gmra.mrb[16].mxu1 %vm1025_vm0, %v3143_v26 }
 0x4c3   : > { %2593 = vmatprep.mubr.msk.bf16.mxu1 %vm2881_vm1, %v2882_v13  ;;  %2586 = vmatpush3.bf16.msra.mxu1 %v2738_v46 }
 0x4c4   : > { %2587 = vmatprep.subr.bf16.mxu1 %v2882_v13 }
 0x4c7   : > { %2588 = vmatpush3.bf16.msra.mxu1 %v2740_v49 }
 0x4c8   : > { %2589 = vmatprep.subr.bf16.mxu1 %v2882_v13 }
 0x4cb   : > { %2590 = vmatpush3.bf16.msra.mxu1 %v2741_v52 }
 0x4cc   : > { %2591 = vmatprep.subr.bf16.mxu1 %v2882_v13 }
 0x4cf   : > { %2592 = vmatpush3.bf16.msra.mxu1 %v2742_v56 }
 0x4d0   : > { %2609 = vmatprep.subr.bf16.mxu1 %v2882_v13 }
 0x522   : > { %v1148_v51 = vpop.xlane.xlu0 %1147 }
 0x523   : > { %vm1149_vm4 = vcmp.eq.f32.partialorder %v3188_v19, %v1148_v51 }
 0x524   : > { %v1150_v53 = vsel %vm1149_vm4, %v3222_v50, 4 }
 0x525   : > { %v1151_v54 = vsel %vm1131_vm2, %v1150_v53, 2147483647 }
 0x526   : > { %v1153_v55 = vshra.s32 %v1151_v54, 16  ;;  %v1152_v28 = vand.u32 65535, %v1151_v54 }
 0x528   : > { %v1155_v57 = vcvt.s32.f32 %v1153_v55  ;;  %v1154_v30 = vcvt.s32.f32 %v1152_v28 }
 0x52a   : > { %1156 = vmin.xlane.f32.xlu1 %v1155_v57 }
 0x57d   : > { %v3233_v58 = vpop.f32.mrb[8].mxu1 }
 0x57e   : > { %v2535_v59 = vpop.f32.mrb[9].mxu1 }
 0x57f   : > { %v1468_v60 = vpop.f32.mrb[10].mxu1 }
 0x580   : > { %v2536_v61 = vpop.f32.mrb[11].mxu1 }
 0x58d   : > { %v1639_v63 = vpop.f32.mrb[12].mxu1 }
 0x58e   : > { %v1640_v1 = vadd.f32 %v2391_v62, %v1639_v63  ;;  %v2555_v2 = vpop.f32.mrb[13].mxu1 }
 0x58f   : > { %v1642_v3 = vpop.f32.mrb[14].mxu1  ;;  %v2745_v2 = vld [vmem:[%s3407_s23] sm:$0xff]  }
 0x590   : > { %v1646_v4 = vmul.f32 0.70710677, %v1640_v1  ;;  %v2556_v5 = vpop.f32.mrb[15].mxu1  ;;  %v1645_v15 = vmul.f32 0.5, %v1640_v1  ;;  %v2746_v3 = vld [vmem:[%s3407_s23 + $0x8] sm:$0xff]  }
 0x591   : > { %v2748_v5 = vld [vmem:[%s3407_s23 + $0x18] sm:$0xff]  }
 0x592   : > { %2771 = verf.f32 %v1646_v4  ;;  %v2747_v4 = vld [vmem:[%s3407_s23 + $0x10] sm:$0xff]  }
 0x595   : > { %v1894_v7 = vpop.f32.mrb[16].mxu1 }
 0x596   : > { %v1895_v8 = vadd.f32 %v2409_v6, %v1894_v7  ;;  %v2583_v9 = vpop.f32.mrb[17].mxu1 }
 0x597   : > { %v1897_v10 = vpop.f32.mrb[18].mxu1 }
 0x598   : > { %v1901_v11 = vmul.f32 0.70710677, %v1895_v8  ;;  %v2584_v12 = vpop.f32.mrb[19].mxu1  ;;  %v1900_v21 = vmul.f32 0.5, %v1895_v8 }
 0x59a   : > { %2773 = verf.f32 %v1901_v11 }
 0x59c   : > { %v2772_v14 = vpop.eup %2771 }
 0x59d   : > { %v1648_v16 = vadd.f32 1.0, %v2772_v14  ;;  %v2413_v14 = vld [vmem:[%s3408_s2] ss:$0 sm:$0xff]  ;;  %s1004_s2 = sand.u32 1, %s2837_s10  }
 0x59e   : > { %s2223_s9 = scalar_lea.sflag [#allocation3], %s1004_s2 }
 0x59f   : > { %v1649_v17 = vmul.f32 %v1648_v16, %v1645_v15 }
 0x5a1   : > { %v1650_v18 = vpack.c.bf16 %v1649_v17, %v1649_v17 }
 0x5a3   : > { %2562 = vmatmul.mubr.msk.bf16.vlgmr.msra.gmra.mrb[8].mxu0 %vm1025_vm0, %v1650_v18  ;;  %v2401_v18 = vld [vmem:[%s3409_s3] ss:$0 sm:$0xff]  ;;  %s3413_s3 = sld [smem:[#allocation10_spill]] }
 0x5a4   : > { %v2774_v20 = vpop.eup %2773  ;;  %2573 = vmatprep.mubr.msk.bf16.mxu0 %vm2881_vm1, %v2882_v13  ;;  %2566 = vmatpush3.bf16.msra.mxu0 %v2745_v2 }
 0x5a5   : > { %v1903_v22 = vadd.f32 1.0, %v2774_v20  ;;  %2567 = vmatprep.subr.bf16.mxu0 %v2882_v13 }
 0x5a7   : > { %v1904_v23 = vmul.f32 %v1903_v22, %v1900_v21  ;;  %v2402_v21 = vld [vmem:[%s3410_s4] ss:$0 sm:$0xff]  ;;  %s3415_s4 = sld [smem:[#allocation25_spill]] }
 0x5a8   : > { %2568 = vmatpush3.bf16.msra.mxu0 %v2746_v3 }
 0x5a9   : > { %v1905_v25 = vpack.c.bf16 %v1904_v23, %v1904_v23  ;;  %2569 = vmatprep.subr.bf16.mxu0 %v2882_v13 }
 0x5ab   : > { %2594 = vmatmul.mubr.msk.bf16.vlgmr.msra.gmra.mrb[20].mxu1 %vm1320_vm3, %v1905_v25  ;;  %v2425_v25 = vld [vmem:[%s3412_s6] ss:$0 sm:$0xff]  ;;  %s3414_s6 = sld [smem:[#allocation19_spill]] }
 0x5ac   : > { %2610 = vmatpush3.bf16.msra.mxu1 %v2743_v24  ;;  %2613 = vmatprep.mubr.msk.bf16.mxu1 %vm2881_vm1, %v2882_v13  ;;  %v2749_v24 = vld [vmem:[%s3411_s5] sm:$0xff]  }
 0x5ad   : > { %2611 = vmatprep.subr.bf16.mxu1 %v2882_v13  ;;  %2570 = vmatpush3.bf16.msra.mxu0 %v2747_v4 }
 0x5ae   : > { %2571 = vmatprep.subr.bf16.mxu0 %v2882_v13 }
 0x5b0   : > { %2612 = vmatpush3.bf16.msra.mxu1 %v2744_v27 }
 0x5b1   : > { %2572 = vmatpush3.bf16.msra.mxu0 %v2748_v5 }
 0x5b2   : > { %2597 = vmatprep.subr.bf16.mxu0 %v2882_v13 }
 0x5b3   : > { %2614 = vmatmul.mubr.msk.bf16.vlgmr.msra.gmra.mrb[24].mxu1 %vm1025_vm0, %v3143_v26 }
 0x5b7   : > { %v1157_v29 = vpop.xlane.xlu1 %1156 }
 0x5b8   : > { %vm1158_vm5 = vcmp.eq.f32.partialorder %v1155_v57, %v1157_v29  ;;  %v1163_v32 = vcvt.f32.s32 %v1157_v29  ;;  %v2750_v29 = vld [vmem:[%s3411_s5 + $0x8] sm:$0xff]  }
 0x5b9   : > { %v1159_v31 = vsel %vm1158_vm5, %v1154_v30, inf }
 0x5ba   : > { %1160 = vmin.xlane.f32.xlu0 %v1159_v31  ;;  %v1164_v34 = vshll.u32 %v1163_v32, 16  ;;  %v2751_v32 = vld [vmem:[%s3411_s5 + $0x10] sm:$0xff]  }
 0x647   : > { %v1161_v33 = vpop.xlane.xlu0 %1160 }
 0x648   : > { %v1162_v35 = vcvt.f32.s32 %v1161_v33 }
 0x64a   : > { %v3248_v36 = vadd.s32 %v1164_v34, %v1162_v35  ;;  %v2752_v35 = vld [vmem:[%s3411_s5 + $0x18] sm:$0xff]   ;;  %s2363_s5 = sshll.u32 %s1004_s2, 3 }
 0x64c   : > { %vm1166_vm6 = vcmp.eq.s32.totalorder %v3222_v50, %v3248_v36 }
 0x64d   : > { %v1168_v26 = vsel %vm1166_vm6, -inf, %v3188_v19 }
 0x64e   : > { %v1169_v37 = vsel %vm1131_vm2, %v1168_v26, -inf }
 0x64f   : > { %1170 = vmax.xlane.f32.xlu0 %v1169_v37  ;;  %v2753_v37 = vld [vmem:[%s3046_s24] sm:$0xff]  }
 0x676   : > { %v1706_v39 = vpop.f32.mrb[8].mxu0 }
 0x677   : > { %v1707_v40 = vadd.f32 %v2397_v38, %v1706_v39  ;;  %v2563_v41 = vpop.f32.mrb[9].mxu0  ;;  %v2754_v39 = vld [vmem:[%s3046_s24 + $0x8] sm:$0xff]  }
 0x678   : > { %v1709_v42 = vpop.f32.mrb[10].mxu0  ;;  %v2755_v41 = vld [vmem:[%s3046_s24 + $0x10] sm:$0xff]  }
 0x679   : > { %v2564_v43 = vpop.f32.mrb[11].mxu0  ;;  %v1712_v44 = vsel %vm1320_vm3, %v1707_v40, 0.0 }
 0x67a   : > { %1713 = vadd.xlane.f32.xlu1 %v1712_v44  ;;  %v2756_v44 = vld [vmem:[%s3046_s24 + $0x18] sm:$0xff]  }
 0x67e   : > { %v1973_v45 = vpop.f32.mrb[20].mxu1 }
 0x67f   : > { %v2595_v46 = vpop.f32.mrb[21].mxu1  ;;  %v1974_v15 = vadd.f32 %v2413_v14, %v1973_v45 }
 0x680   : > { %v1976_v47 = vpop.f32.mrb[22].mxu1 }
 0x681   : > { %v2596_v48 = vpop.f32.mrb[23].mxu1  ;;  %v1980_v16 = vmul.f32 0.70710677, %v1974_v15  ;;  %v1979_v34 = vmul.f32 0.5, %v1974_v15 }
 0x686   : > { %v2130_v49 = vpop.f32.mrb[24].mxu1 }
 0x687   : > { %v2615_v51 = vpop.f32.mrb[25].mxu1  ;;  %v2131_v28 = vadd.f32 %v2425_v25, %v2130_v49  ;;  %v2429_v25 = vld [vmem:[%s3051_s20] ss:$0 sm:$0xff] }
 0x688   : > { %v2133_v52 = vpop.f32.mrb[26].mxu1 }
 0x689   : > { %v2616_v53 = vpop.f32.mrb[27].mxu1  ;;  %v2137_v31 = vmul.f32 0.70710677, %v2131_v28  ;;  %v2136_v43 = vmul.f32 0.5, %v2131_v28 }
 0x68a   : > { %v1167_v53 = vsel %vm1166_vm6, 1.0, %v2882_v13 }
 0x6dc   : > { %v1171_v54 = vpop.xlane.xlu0 %1170 }
 0x6dd   : > { %vm1172_vm7 = vcmp.eq.f32.partialorder %v1168_v26, %v1171_v54 }
 0x6de   : > { %v1173_v55 = vsel %vm1172_vm7, %v3222_v50, 4 }
 0x6df   : > { %v1174_v56 = vsel %vm1131_vm2, %v1173_v55, 2147483647 }
 0x6e0   : > { %v1176_v57 = vshra.s32 %v1174_v56, 16  ;;  %v1175_v6 = vand.u32 65535, %v1174_v56 }
 0x6e2   : > { %v1178_v59 = vcvt.s32.f32 %v1176_v57  ;;  %v1177_v8 = vcvt.s32.f32 %v1175_v6  ;;  %v2883_v57 = vmov 1  }
 0x6e3   : > { %2715 = vset.pattern.permute.xlu0 %v2883_v57 }
 0x6e4   : > { %1179 = vmin.xlane.f32.xlu0 %v1178_v59 }
 0x707   : > { %v1714_v60 = vpop.xlane.xlu1 %1713 }
 0x708   : > { %v1715_v61 = vmul.f32 0.015625, %v1714_v60 }
 0x70a   : > { %v1716_v62 = vsub.f32 %v1707_v40, %v1715_v61 }
 0x70c   : > { %v1717_v63 = vmul.f32 %v1716_v62, %v1716_v62 }
 0x70e   : > { %v1718_v1 = vsel %vm1320_vm3, %v1717_v63, 0.0 }
 0x70f   : > { %1719 = vadd.xlane.f32.xlu1 %v1718_v1 }
 0x771   : > { %v3270_v7 = vpop.xlane.xlu0 %1179 }
 0x772   : > { %vm1181_vm8 = vcmp.eq.f32.partialorder %v1178_v59, %v3270_v7  ;;  %v1186_v47 = vcvt.f32.s32 %v3270_v7  ;;  %v2884_v59 = vmov 0  }
 0x773   : > { %v1182_v9 = vsel %vm1181_vm8, %v1177_v8, inf  ;;  %2714 = vset.pattern.permute.xlu1 %v2884_v59  ;;  %v2885_v8 = vmov 2  }
 0x774   : > { %1183 = vmin.xlane.f32.xlu1 %v1182_v9  ;;  %v1187_v49 = vshll.u32 %v1186_v47, 16  ;;  %v2886_v9 = vmov 3  }
 0x79c   : > { %v1720_v10 = vpop.xlane.xlu1 %1719 }
 0x79d   : > { %v1721_v11 = vmul.f32 0.015625, %v1720_v10  ;;  %v2381_v10 = vld [vmem:[%s3413_s3] ss:$0 sm:$0xff]  ;;  %s2436_s3 = sshll.u32 %s3084_s0, 7  ;;  %s2887_s0 = smov [#allocation2]  }
 0x79f   : > { %v1722_v12 = vadd.f32 1e-05, %v1721_v11  ;;  %v2403_v11 = vld [vmem:[%s3414_s6] ss:$0 sm:$0xff]  ;;  %s1006_s6 = scalar_lea.vmem [#allocation2], %s2363_s5  ;;  %s2787_s5 = sshll.u32 %s2887_s0, 4  ;;  %s2788_s5 = int_to_ptr.vmem [resolvable:$false] %s2787_s5 }
 0x7a0   : > { %s2240_s8 = sshll.u32 %s1006_s6, 4  ;;  %s2789_s13 = scalar_lea.vmem %s2788_s5, 256  ;;  %s3318_s8 = int_to_ptr.vmem [resolvable:$true] %s2240_s8 }
 0x7a1   : > { %2775 = vrsqrt.f32 %v1722_v12  ;;  %v1466_v12 = vadd.f32 %v2381_v10, %v3233_v58  ;;  %s2783_s12 = scalar_lea.vmem %s3318_s8, 128  ;;  %p2790_p0 = scmp.lt.s32.totalorder %s3318_s8, %s2788_s5 }
 0x7a2   : > { %2777 = verf.f32 %v1980_v16  ;;  %p2784_p11 = scmp.ne.s32.totalorder %s3318_s8, %s2783_s12  ;;  %p2791_p1 = scmp.lt.s32.totalorder %s2789_s13, %s2783_s12 }
 0x7a3   : > { %2779 = verf.f32 %v2137_v31 }
 0x7a4   : > { %p2785_p12 = pnand %p2784_p11, %p3101_p5  ;;  %p2792_p2 = por %p2791_p1, %p2790_p0 }
 0x7a6   : > { %p2786_p13 = pneg %p2785_p12 }
 0x7a8   : > { %p2793_p3 = pnand %p2792_p2, %p2786_p13 }
 0x7ab   : > { %v2776_v17 = vpop.eup %2775 }
 0x7ac   : > { %v1724_v20 = vmul.f32 %v2776_v17, %v1716_v62  ;;  %v2778_v30 = vpop.eup %2777  ;;  %v2419_v17 = vld [vmem:[%s3415_s4] ss:$0 sm:$0xff]  ;;  %s3316_s4 = scalar_lea.hbm %s3056_s27, %s2436_s3 }
 0x7ad   : > { %v1982_v33 = vadd.f32 1.0, %v2778_v30  ;;  %v2780_v40 = vpop.eup %2779 }
 0x7ae   : > { %v1731_v22 = vmul.f32 %v2401_v18, %v1724_v20  ;;  %v2139_v42 = vadd.f32 1.0, %v2780_v40 }
 0x7af   : > { %v1983_v26 = vmul.f32 %v1982_v33, %v1979_v34 }
 0x7b0   : > { %v1738_v23 = vadd.f32 %v2402_v21, %v1731_v22  ;;  %v2140_v45 = vmul.f32 %v2139_v42, %v2136_v43 }
 0x7b1   : > { %v1984_v38 = vpack.c.bf16 %v1983_v26, %v1983_v26 }
 0x7b2   : > { %v1739_v27 = vpack.c.bf16 %v1738_v23, %v1738_v23  ;;  %v2141_v46 = vpack.c.bf16 %v2140_v45, %v2140_v45 }
 0x7b4   : > { %2574 = vmatmul.mubr.msk.bf16.vlgmr.msra.gmra.mrb[12].mxu0 %vm1320_vm3, %v1739_v27 }
 0x7b5   : > { %2598 = vmatpush3.bf16.msra.mxu0 %v2749_v24  ;;  %2605 = vmatprep.mubr.msk.bf16.mxu0 %vm2881_vm1, %v2882_v13 }
 0x7b6   : > { %2599 = vmatprep.subr.bf16.mxu0 %v2882_v13 }
 0x7b9   : > { %2600 = vmatpush3.bf16.msra.mxu0 %v2750_v29 }
 0x7ba   : > { %2601 = vmatprep.subr.bf16.mxu0 %v2882_v13 }
 0x7bd   : > { %2602 = vmatpush3.bf16.msra.mxu0 %v2751_v32 }
 0x7be   : > { %2603 = vmatprep.subr.bf16.mxu0 %v2882_v13 }
 0x7c1   : > { %2604 = vmatpush3.bf16.msra.mxu0 %v2752_v35 }
 0x7c2   : > { %2617 = vmatprep.subr.bf16.mxu0 %v2882_v13 }
 0x7c4   : > { %2606 = vmatmul.mubr.msk.bf16.vlgmr.msra.gmra.mrb[16].mxu0 %vm1320_vm3, %v1984_v38 }
 0x7c5   : > { %2618 = vmatpush3.bf16.msra.mxu0 %v2753_v37  ;;  %2625 = vmatprep.mubr.msk.bf16.mxu0 %vm2881_vm1, %v2882_v13 }
 0x7c6   : > { %2619 = vmatprep.subr.bf16.mxu0 %v2882_v13 }
 0x7c9   : > { %2620 = vmatpush3.bf16.msra.mxu0 %v2754_v39 }
 0x7ca   : > { %2621 = vmatprep.subr.bf16.mxu0 %v2882_v13 }
 0x7cd   : > { %2622 = vmatpush3.bf16.msra.mxu0 %v2755_v41 }
 0x7ce   : > { %2623 = vmatprep.subr.bf16.mxu0 %v2882_v13 }
 0x7d1   : > { %2624 = vmatpush3.bf16.msra.mxu0 %v2756_v44 }
 0x7d4   : > { %2626 = vmatmul.mubr.msk.bf16.vlgmr.msra.gmra.mrb[20].mxu0 %vm1320_vm3, %v2141_v46 }
 0x801   : > { %v1184_v48 = vpop.xlane.xlu1 %1183 }
 0x802   : > { %v1185_v51 = vcvt.f32.s32 %v1184_v48 }
 0x804   : > { %v1188_v52 = vadd.s32 %v1187_v49, %v1185_v51 }
 0x806   : > { %vm1189_vm9 = vcmp.eq.s32.totalorder %v3222_v50, %v1188_v52 }
 0x807   : > { %v1190_v54 = vsel %vm1189_vm9, 1.0, %v1167_v53 }
 0x808   : > { %v1191_v55 = vmul.f32 %v1190_v54, %v3188_v19 }
 0x80a   : > { %v1192_v56 = vsel %vm1131_vm2, %v1191_v55, 0.0 }
 0x80b   : > { %1193 = vadd.xlane.f32.xlu0 %v1192_v56 }
 0x887   : > { %v1807_v60 = vpop.f32.mrb[12].mxu0 }
 0x888   : > { %v2575_v61 = vpop.f32.mrb[13].mxu0  ;;  %v1808_v16 = vadd.f32 %v2403_v11, %v1807_v60 }
 0x889   : > { %v1810_v62 = vpop.f32.mrb[14].mxu0 }
 0x88a   : > { %v2576_v63 = vpop.f32.mrb[15].mxu0 }
 0x897   : > { %v2052_v1 = vpop.f32.mrb[16].mxu0 }
 0x898   : > { %v2607_v2 = vpop.f32.mrb[17].mxu0  ;;  %v1194_v36 = vpop.xlane.xlu0 %1193  ;;  %v2053_v22 = vadd.f32 %v2419_v17, %v2052_v1 }
 0x899   : > { %2781 = vrcp.f32 %v1194_v36  ;;  %v2055_v13 = vpop.f32.mrb[18].mxu0 }
 0x89a   : > { %v2608_v50 = vpop.f32.mrb[19].mxu0 }
 0x8a3   : > { %v2782_v3 = vpop.eup %2781 }
 0x8a4   : > { %v1196_v19 = vmul.f32 %v2782_v3, %v1191_v55 }
 0x8a6   : > { %1814 = vperm.xlu0 %2715, %v1196_v19   ;;  %1473 = vperm.xlu1 %2714, %v1196_v19  }
 0x8a7   : > { %v2209_v4 = vpop.f32.mrb[20].mxu0 }
 0x8a8   : > { %v2627_v5 = vpop.f32.mrb[21].mxu0  ;;  %v2210_v58 = vadd.f32 %v2429_v25, %v2209_v4 }
 0x8a9   : > { %v2212_v6 = vpop.f32.mrb[22].mxu0 }
 0x8aa   : > { %v2628_v7 = vpop.f32.mrb[23].mxu0  ;;  %2716 = vset.pattern.permute.xlu1 %v2885_v8  ;;  %2718 = vset.pattern.permute.xlu0 %v2886_v9 }
 0x8ab   : > { %2059 = vperm.xlu1 %2716, %v1196_v19  }
 0x8af   : > { %2717 = vset.pattern.permute.xlu1 %v2886_v9 }
 0x8b0   : > { %2216 = vperm.xlu1 %2717, %v1196_v19  }
 0x925   : > { %v1815_v14 = vpop.permute.xlu0 %1814  ;;  %v1474_v15 = vpop.permute.xlu1 %1473 }
 0x926   : > { %v1476_v18 = vmul.f32 %v1474_v15, %v1466_v12  ;;  %v1817_v20 = vmul.f32 %v1815_v14, %v1808_v16 }
 0x928   : > { %v1477_v21 = vadd.f32 %v1476_v18, %v3119_v0 }
 0x92a   : > { %v2060_v23 = vpop.permute.xlu1 %2059  ;;  %v1818_v24 = vadd.f32 %v1817_v20, %v1477_v21 }
 0x92b   : > { %v2062_v27 = vmul.f32 %v2060_v23, %v2053_v22 }
 0x92d   : > { %v2063_v28 = vadd.f32 %v2062_v27, %v1818_v24 }
 0x92f   : > { %v2217_v29 = vpop.permute.xlu1 %2216 }
 0x930   : > { %v2219_v30 = vmul.f32 %v2217_v29, %v2210_v58 }
 0x932   : > { %v2220_v31 = vadd.f32 %v2219_v30, %v2063_v28 }
 0x934   : > { %2221 = vst.msk [vmem:[%s1006_s6] sm:$0xff] %vm1025_vm0, %v2220_v31 }
 0x935   : > { %2796 = shalt.err (!%p2793_p3)
}
 0x936   : > { %s2797_s2 = scalar_lea.hbm %s3316_s4, 128  ;;  %s2801_s3 = scalar_lea.hbm %s3056_s27, 256 }
 0x937   : > { %p2798_p4 = scmp.ne.s32.totalorder %s3316_s4, %s2797_s2  ;;  %p2802_p9 = scmp.lt.u32.totalorder %s3316_s4, %s3056_s27 }
 0x938   : > { %p2803_p10 = scmp.lt.u32.totalorder %s2801_s3, %s2797_s2  ;;  %p2805_p12 = scmp.lt.u32.totalorder %s2797_s2, %s3316_s4 }
 0x939   : > { %p2799_p7 = pnand %p2798_p4, %p3101_p5 }
 0x93a   : > { %p2804_p11 = por %p2803_p10, %p2802_p9 }
 0x93b   : > { %p2800_p8 = pneg %p2799_p7 }
 0x93c   : > { %p2806_p0 = por %p2805_p12, %p2804_p11 }
 0x93e   : > { %p2807_p13 = pnand %p2806_p0, %p2800_p8 }
 0x940   : > { %2810 = shalt.err (!%p2807_p13)
}
 0x941   : > { %2635 = dma.vmem_to_hbm [thread:$0]  (%p3101_p5), %s3318_s8, 128, %s3316_s4, %s2223_s9  }
 0x942 PF: > { %p2641_p1 = scmp.ge.s32.totalorder %s2845_s15, 2  ;;  %s2255_s13 = sand.u32 1, %s2833_s7  }
 0x943   : > { %s2256_s12 = scalar_lea.sflag [#allocation3], %s2255_s13 }
 0x944   : > { %p2638_p2 = pnand %p2641_p1, %p3105_p6 }
 0x946   : > { %2828 = dma.done.wait (!%p2638_p2), %s2256_s12, 128  }
 0x947   : > { %2830 = vsyncadd (!%p2638_p2), %s2256_s12, 4294967168  ;;  %p78_p3 = scmp.ge.s32.totalorder %s3088_s18, 4   ;;  %s3416_s7 = smov %s2837_s10 }
 0x948   : > { %s3417_s10 = smov %s2841_s11  ;;  %s3418_s11 = smov %s3099_s26 }
 0x949   : > { %s3419_s15 = smov %s3088_s18  ;;  %80 = sbr.rel (!%p78_p3) target bundleno = 70 (0x46), region = 228 }
 0x950   :  { %2268 = vsyncpa [#allocation3], 1 }
 0x951   :  { %2270 = vsyncpa [#allocation3 + $0x1], 1 }

</bundles_post_ra>
